<compile_context>
chip_gen: v6e
topology: v6e:2x2x1
jax: 0.10.0
libtpu: 0.0.40
codegen_flags: <defaults>
</compile_context>

<pallas_src>
import functools

import jax
import jax.numpy as jnp
import numpy as np
from jax import lax
from jax.experimental import pallas as pl
from jax.experimental.pallas import tpu as pltpu


# ------------- fused conv(weight-norm) + ReLU + 2x2 maxpool kernel -------------
def _conv_relu_pool_kernel(x_ref, w_ref, o_ref, *, K, W, Cin, TCout, THo,
                           band_blocked):
    # x_ref: band_blocked -> (1, TH, W, Cin) un-padded band (pointwise / im2col'd layer)
    #        else         -> (1, Hp, Wp, Cin) zero-padded full image of this batch elem
    # w_ref: (K*K, Cin, TCout)   weight-normalized conv weights, bf16
    # o_ref: (1, THo, W//2, TCout)  one band x one Cout tile of pooled output
    TH = 2 * THo                       # conv output rows computed in this band
    Wo = W // 2
    h0 = 0 if band_blocked else pl.program_id(2) * TH   # first padded row of the band

    # Accumulate K*K per-tap matmuls (MXU, bf16 in / f32 acc).  No im2col slab.
    acc = jnp.zeros((TH * W, TCout), jnp.float32)
    for dh in range(K):
        for dw in range(K):
            xt = x_ref[0, pl.ds(h0 + dh, TH), pl.ds(dw, W), :]      # (TH, W, Cin)
            acc = acc + jnp.dot(xt.reshape(TH * W, Cin),
                                w_ref[dh * K + dw],
                                preferred_element_type=jnp.float32)

    y = jnp.maximum(acc, 0.0)                 # ReLU (dropout = identity in eval mode)

    # 2x2 / stride-2 max pool, in-register on the f32 result before the pooled store.
    y = jnp.max(y.reshape(THo, 2, W, TCout), axis=1)        # row-pair max  (THo, W, TCout)
    y = jnp.max(y.reshape(THo, Wo, 2, TCout), axis=2)       # col-pair max  (THo, Wo, TCout)
    o_ref[0] = y.astype(o_ref.dtype)


def _pick_band_rows(Ho, W, target_m=2048):
    # Pooled rows per band: largest THo dividing Ho with matmul M = 2*THo*W <= target_m.
    best = 1
    for cand in range(1, Ho + 1):
        if Ho % cand == 0 and 2 * cand * W <= target_m:
            best = cand
    return best


def _pick_cout_tile(Cout):
    # MXU-width Cout tiles keep the post-matmul f32 working set near vreg capacity and
    # the per-step weight block small.  256 suits v6e/v7x; drop to 128 when tuning v5e.
    for t in (256, 128):
        if Cout > t and Cout % t == 0:
            return t
    return Cout


def conv_relu_pool(x, w_packed, K, pad_input):
    # x: (N, H, W, Cin) NHWC bf16; w_packed: (K*K, Cin, Cout) bf16
    # returns pooled activation (N, H//2, W//2, Cout) bf16
    N, H, Wd, Cin = map(int, x.shape)
    KK, Cin_w, Cout = map(int, w_packed.shape)
    assert KK == K * K and Cin_w == Cin
    assert H % 2 == 0 and Wd % 2 == 0, "MaxPool2d(2) path expects even H, W"
    Ho, Wo = H // 2, Wd // 2
    THo = _pick_band_rows(Ho, Wd)
    nb = Ho // THo
    TCout = _pick_cout_tile(Cout)
    nct = Cout // TCout

    if pad_input:
        pad = K // 2
        x_in = jnp.pad(x, ((0, 0), (pad, pad), (pad, pad), (0, 0)))
        Hp, Wp = H + 2 * pad, Wd + 2 * pad
        # Full padded image, indexed by batch only: stays resident across Cout tiles
        # and bands (no redundant re-DMA).
        x_spec = pl.BlockSpec((1, Hp, Wp, Cin), lambda n, c, b: (n, 0, 0, 0))
    else:
        # Pointwise (im2col'd) layer: band-sized blocks, no halo needed.
        x_in = x
        x_spec = pl.BlockSpec((1, 2 * THo, Wd, Cin), lambda n, c, b: (n, b, 0, 0))

    kern = functools.partial(_conv_relu_pool_kernel, K=K, W=Wd, Cin=Cin,
                             TCout=TCout, THo=THo, band_blocked=not pad_input)
    return pl.pallas_call(
        kern,
        out_shape=jax.ShapeDtypeStruct((N, Ho, Wo, Cout), x.dtype),
        grid=(N, nct, nb),
        in_specs=[
            x_spec,
            pl.BlockSpec((KK, Cin, TCout), lambda n, c, b: (0, 0, c)),
        ],
        out_specs=pl.BlockSpec((1, THo, Wo, TCout), lambda n, c, b: (n, b, 0, c)),
        compiler_params=pltpu.CompilerParams(
            # Only the batch axis is 'parallel': on v7x the two TensorCores then work
            # on distinct, resident images instead of re-fetching the same one.
            dimension_semantics=("parallel", "arbitrary", "arbitrary"),
            vmem_limit_bytes=64 * 1024 * 1024),
    )(x_in, w_packed)


# --------------------- global average pool + linear classifier -------------------
def _avgpool_linear_kernel(x_ref, w_ref, b_ref, o_ref, *, inv_hw):
    # x_ref: (1, H, W, C) bf16; w_ref: (C, num_classes) f32; b_ref: (1, num_classes) f32
    x = x_ref[...].astype(jnp.float32)
    s = jnp.sum(x, axis=2)                     # (1, H, C)
    s = jnp.sum(s, axis=1)                     # (1, C)
    pooled = s * inv_hw                        # adaptive avg pool to 1x1
    logits = jnp.dot(pooled, w_ref[...],
                     preferred_element_type=jnp.float32) + b_ref[...]
    o_ref[...] = logits.astype(o_ref.dtype)


def avgpool_linear(x, w, b):
    N, H, W, C = map(int, x.shape)
    num_classes = int(w.shape[1])
    kern = functools.partial(_avgpool_linear_kernel, inv_hw=1.0 / float(H * W))
    return pl.pallas_call(
        kern,
        out_shape=jax.ShapeDtypeStruct((N, num_classes), jnp.float32),
        grid=(N,),
        in_specs=[
            pl.BlockSpec((1, H, W, C), lambda n: (n, 0, 0, 0)),
            pl.BlockSpec((C, num_classes), lambda n: (0, 0)),
            pl.BlockSpec((1, num_classes), lambda n: (0, 0)),
        ],
        out_specs=pl.BlockSpec((1, num_classes), lambda n: (n, 0)),
        compiler_params=pltpu.CompilerParams(
            dimension_semantics=("parallel",),
            vmem_limit_bytes=64 * 1024 * 1024),
    )(x, w, b)


# ----------------------------------- forward -------------------------------------
def _im2col_nhwc(x, K):
    # Host-side (XLA) im2col for the tiny-Cin first layer: (N,H,W,C) -> (N,H,W,K*K*C),
    # tap order (dh, dw, cin) matching the (K,K,Cin,Cout) weight packing.
    pad = K // 2
    xp = jnp.pad(x, ((0, 0), (pad, pad), (pad, pad), (0, 0)))
    N, Hp, Wp, C = map(int, xp.shape)
    H, W = Hp - 2 * pad, Wp - 2 * pad
    taps = [xp[:, dh:dh + H, dw:dw + W, :] for dh in range(K) for dw in range(K)]
    return jnp.concatenate(taps, axis=-1)


def block_forward(x_nchw, conv_ws_packed, kernel_sizes, lin_w_ck, lin_b_1k):
    # NCHW (PyTorch) -> NHWC (kernel layout); bf16 on the MXU path.
    x = jnp.transpose(x_nchw, (0, 2, 3, 1)).astype(jnp.bfloat16)
    for li, (w, K) in enumerate(zip(conv_ws_packed, kernel_sizes)):
        if li == 0:
            # Cin=3 layer: host-side im2col, kernel does a pointwise matmul of depth K*K*Cin.
            x = _im2col_nhwc(x, K)
            x = conv_relu_pool(x, w, K=1, pad_input=False)
        else:
            x = conv_relu_pool(x, w, K=K, pad_input=True)
    return avgpool_linear(x, lin_w_ck, lin_b_1k)


# --------------------------- pure-JAX reference (check) ---------------------------
def block_forward_ref(x_nchw, conv_w_eff, kernel_sizes, lin_w, lin_b):
    # Matches the kernel's numerics: bf16 conv inputs/weights, f32 accumulation.
    x = jnp.transpose(x_nchw, (0, 2, 3, 1))
    for w, K in zip(conv_w_eff, kernel_sizes):
        w_hwio = jnp.transpose(w, (2, 3, 1, 0)).astype(jnp.bfloat16)   # (K,K,Cin,Cout)
        x = lax.conv_general_dilated(
            x.astype(jnp.bfloat16), w_hwio, window_strides=(1, 1), padding="SAME",
            dimension_numbers=("NHWC", "HWIO", "NHWC"),
            preferred_element_type=jnp.float32)
        x = jnp.maximum(x, 0.0)
        x = lax.reduce_window(x, -jnp.inf, lax.max,
                              (1, 2, 2, 1), (1, 2, 2, 1), "VALID")
    pooled = jnp.mean(x, axis=(1, 2))
    return jnp.dot(pooled, lin_w.T,
                   precision=lax.Precision.HIGHEST) + lin_b


if __name__ == "__main__":
    key = jax.random.PRNGKey(0)
    num_classes = 10
    in_channels = 3
    hidden_dims = (8, 16, 32)     # small synthetic sizes (module default: 128/256/512)
    kernel_sizes = (3, 3, 3)
    N, H, W = 2, 16, 16

    keys = jax.random.split(key, 1 + 2 * len(hidden_dims) + 2)
    x_nchw = jax.random.normal(keys[0], (N, in_channels, H, W), jnp.float32)

    # Deterministic parameter init; weight_norm folded in f32: W_eff = g * v / ||v||.
    conv_w_eff = []
    c_in = in_channels
    ki = 1
    for c_out, K in zip(hidden_dims, kernel_sizes):
        v = 0.2 * jax.random.normal(keys[ki], (c_out, c_in, K, K), jnp.float32)
        g = jax.random.uniform(keys[ki + 1], (c_out, 1, 1, 1), jnp.float32, 0.5, 1.5)
        norm = jnp.sqrt(jnp.sum(v * v, axis=(1, 2, 3), keepdims=True))
        conv_w_eff.append(v * (g / norm))
        c_in = c_out
        ki += 2

    lin_w = jax.random.normal(keys[ki], (num_classes, hidden_dims[-1]),
                              jnp.float32) / jnp.sqrt(float(hidden_dims[-1]))
    lin_b = 0.1 * jax.random.normal(keys[ki + 1], (num_classes,), jnp.float32)

    # Pack weights for the kernels (fold weight_norm in f32, THEN cast to bf16):
    #   layer 0:  (Cout,Cin,K,K) -> (K,K,Cin,Cout) -> (1, K*K*Cin, Cout)   (im2col'd input)
    #   layer >0: (Cout,Cin,K,K) -> (K,K,Cin,Cout) -> (K*K, Cin, Cout)     (per-tap accumulate)
    #   linear:   (classes,C) -> (C,classes) f32; bias -> (1,classes) f32
    conv_w_packed = []
    for idx, w in enumerate(conv_w_eff):
        c_out, c_inn, K, _ = map(int, w.shape)
        w_kkio = jnp.transpose(w, (2, 3, 1, 0))
        if idx == 0:
            packed = w_kkio.reshape(1, K * K * c_inn, c_out)
        else:
            packed = w_kkio.reshape(K * K, c_inn, c_out)
        conv_w_packed.append(packed.astype(jnp.bfloat16))
    lin_w_ck = jnp.transpose(lin_w)          # (C, num_classes), f32
    lin_b_1k = lin_b.reshape(1, -1)          # (1, num_classes), f32

    out = block_forward(x_nchw, conv_w_packed, kernel_sizes, lin_w_ck, lin_b_1k)
    out = jax.block_until_ready(out)

    ref = block_forward_ref(x_nchw, conv_w_eff, kernel_sizes, lin_w, lin_b)
    np.testing.assert_allclose(np.asarray(out), np.asarray(ref), rtol=2e-2, atol=2e-2)
    print("KERNEL_OK")
</pallas_src>

<mosaic_0001>
module attributes {stable_mosaic.version = 11 : i64} {
  func.func @_conv_relu_pool_kernel(%arg0: i32, %arg1: i32, %arg2: i32, %arg3: memref<1x16x16x27xbf16, #tpu.memory_space<vmem>>, %arg4: memref<1x27x8xbf16, #tpu.memory_space<vmem>>, %arg5: memref<1x8x8x8xbf16, #tpu.memory_space<vmem>>) attributes {dimension_semantics = [#tpu.dimension_semantics<parallel>, #tpu.dimension_semantics<arbitrary>, #tpu.dimension_semantics<arbitrary>], iteration_bounds = array<i64: 2, 1, 1>, scalar_prefetch = 0 : i64, scratch_operands = 0 : i64, tpu.core_type = #tpu.core_type<tc>, window_params = [{transform_indices = @transform_0, window_bounds = array<i64: 1, 16, 16, 27>}, {transform_indices = @transform_1, window_bounds = array<i64: 1, 27, 8>}, {transform_indices = @transform_2, window_bounds = array<i64: 1, 8, 8, 8>}]} {
    %cst = arith.constant 0.000000e+00 : f32
    %0 = vector.broadcast %cst : f32 to vector<256x8xf32>
    %c0 = arith.constant 0 : index
    %c0_0 = arith.constant 0 : index
    %c0_1 = arith.constant 0 : index
    %c0_2 = arith.constant 0 : index
    %1 = vector.load %arg3[%c0, %c0_0, %c0_1, %c0_2] : memref<1x16x16x27xbf16, #tpu.memory_space<vmem>>, vector<1x16x16x27xbf16>
    %2 = vector.shape_cast %1 : vector<1x16x16x27xbf16> to vector<16x16x27xbf16>
    %3 = vector.shape_cast %2 : vector<16x16x27xbf16> to vector<256x27xbf16>
    %c0_3 = arith.constant 0 : index
    %c0_4 = arith.constant 0 : index
    %c0_5 = arith.constant 0 : index
    %4 = vector.load %arg4[%c0_3, %c0_4, %c0_5] : memref<1x27x8xbf16, #tpu.memory_space<vmem>>, vector<1x27x8xbf16>
    %5 = vector.shape_cast %4 : vector<1x27x8xbf16> to vector<27x8xbf16>
    %cst_6 = arith.constant dense<0.000000e+00> : vector<256x8xf32>
    %6 = tpu.matmul %3, %5, %cst_6 {dimension_numbers = #tpu.dot_dimension_numbers<[1], [0], [0], [1], [0, 0, 1, 1], [], []>} : vector<256x27xbf16>, vector<27x8xbf16>, vector<256x8xf32> -> vector<256x8xf32>
    %7 = arith.addf %0, %6 : vector<256x8xf32>
    %cst_7 = arith.constant 0.000000e+00 : f32
    %8 = vector.broadcast %cst_7 : f32 to vector<256x8xf32>
    %9 = arith.maximumf %7, %8 : vector<256x8xf32>
    %10 = vector.shape_cast %9 : vector<256x8xf32> to vector<8x2x16x8xf32>
    %cst_8 = arith.constant dense<0xFF800000> : vector<8x16x8xf32>
    %11 = vector.multi_reduction <maximumf>, %10, %cst_8 [1] : vector<8x2x16x8xf32> to vector<8x16x8xf32>
    %12 = vector.shape_cast %11 : vector<8x16x8xf32> to vector<8x8x2x8xf32>
    %cst_9 = arith.constant dense<0xFF800000> : vector<8x8x8xf32>
    %13 = vector.multi_reduction <maximumf>, %12, %cst_9 [2] : vector<8x8x2x8xf32> to vector<8x8x8xf32>
    %14 = arith.truncf %13 : vector<8x8x8xf32> to vector<8x8x8xbf16>
    %c0_10 = arith.constant 0 : index
    %c0_11 = arith.constant 0 : index
    %c0_12 = arith.constant 0 : index
    %c0_13 = arith.constant 0 : index
    %15 = vector.load %arg5[%c0_10, %c0_11, %c0_12, %c0_13] : memref<1x8x8x8xbf16, #tpu.memory_space<vmem>>, vector<1x8x8x8xbf16>
    %16 = vector.shape_cast %15 : vector<1x8x8x8xbf16> to vector<8x8x8xbf16>
    %17 = vector.shape_cast %14 : vector<8x8x8xbf16> to vector<1x8x8x8xbf16>
    tpu.vector_store %arg5[%c0_10, %c0_11, %c0_12, %c0_13], %17 {strides = array<i32>} : memref<1x8x8x8xbf16, #tpu.memory_space<vmem>>, vector<1x8x8x8xbf16>,
    return
  }
  func.func @transform_0(%arg0: i32, %arg1: i32, %arg2: i32) -> (i32, i32, i32, i32) {
    %c0_i32 = arith.constant 0 : i32
    %c0_i32_0 = arith.constant 0 : i32
    %c0_i32_1 = arith.constant 0 : i32
    return %arg0, %arg2, %c0_i32, %c0_i32_0 : i32, i32, i32, i32
  }
  func.func @transform_1(%arg0: i32, %arg1: i32, %arg2: i32) -> (i32, i32, i32) {
    %c0_i32 = arith.constant 0 : i32
    %c0_i32_0 = arith.constant 0 : i32
    %c0_i32_1 = arith.constant 0 : i32
    return %c0_i32, %c0_i32_0, %arg1 : i32, i32, i32
  }
  func.func @transform_2(%arg0: i32, %arg1: i32, %arg2: i32) -> (i32, i32, i32, i32) {
    %c0_i32 = arith.constant 0 : i32
    %c0_i32_0 = arith.constant 0 : i32
    return %arg0, %arg2, %c0_i32, %arg1 : i32, i32, i32, i32
  }
}

</mosaic_0001>

<bundles_post_ra>
// kernel: tpu_custom_call.1
= control target key start
LH: loop header
LB: loop body
LE: loop exit
PB: predicated region body
PF: predicated region fallthrough
CT: control target
= control target key end

     0   :  { %7 = vsyncpa [#allocation3], 0  ;;  %s2884_s0 = inlined_call_operand.hbm [shape: bf16[2,16,16,27], index: 0, kind: input, shape index: {}]   ;;  %s2885_s1 = inlined_call_operand.vmem [shape: bf16[1,27,8], index: 1, kind: input, shape index: {}]   ;;  %s2886_s2 = inlined_call_operand.hbm [shape: bf16[2,8,8,8], index: 2, kind: output, shape index: {}]  }
   0x1   :  { %9 = vsyncpa [#allocation3 + $0x1], 0 }
   0x2   :  { %10 = vsyncpa [#allocation4], 0 }
   0x3   :  { %12 = vsyncpa [#allocation4 + $0x1], 0  ;;  %s2424_s9 = smov 0   ;;  %s2426_s10 = smov 0  }
   0x4   :  { %s2428_s11 = smov 0   ;;  %s2430_s12 = smov 0  }
   0x5   :  { %s2432_s13 = smov 0   ;;  %s2434_s14 = smov 0  }
   0x6 LB: > { %s1967_s15 = sadd.s32 4294967295, %s2399_s14   ;;  %s1968_s16 = sadd.s32 4294967294, %s2399_s14   ;;  %s2399_s14 = sphi %s2434_s14, %s18_s14   ;;  %s2395_s13 = sphi %s2432_s13, %s2897_s13   ;;  %s2391_s12 = sphi %s2430_s12, %s2896_s12   ;;  %s2387_s11 = sphi %s2428_s11, %s2895_s11   ;;  %s2383_s10 = sphi %s2426_s10, %s2894_s10   ;;  %s2379_s9 = sphi %s2424_s9, %s2893_s9  }
   0x7   : > { %s37_s17 = sadd.s32 1, %s2395_s13  ;;  %s46_s18 = sadd.s32 1, %s2387_s11 }
   0x8   : > { %p39_p0 = scmp.ge.s32.totalorder %s37_s17, 2  ;;  %p53_p1 = scmp.ne.s32.totalorder %s2387_s11, %s2383_s10 }
   0x9   : > { %p54_p2 = scmp.eq.s32.totalorder %s2399_s14, 0  ;;  %p59_p3 = scmp.ne.s32.totalorder %s2383_s10, %s2379_s9 }
   0xa   : > { %s2899_s17 = smov (%p39_p0, %s37_s17), 0  ;;  %p60_p5 = scmp.eq.s32.totalorder %s1967_s15, 0 }
   0xb   : > { %p2465_p4 = por %p54_p2, %p53_p1  ;;  %s41_s20 = ssub.s32 %s2395_s13, %s2899_s17 }
   0xc   : > { %p113_p6 = scmp.eq.s32.totalorder %s1967_s15, 1  ;;  %p44_p7 = scmp.eq.s32.totalorder %s41_s20, 0 }
   0xd   : > { %p2471_p8 = por %p60_p5, %p59_p3  ;;  %p119_p10 = scmp.eq.s32.totalorder %s1968_s16, 1 }
   0xe   : > { %p2475_p9 = por %p113_p6, %p53_p1  ;;  %p2217_p13 = scmp.lt.s32.totalorder %s2399_s14, 2 }
   0xf   : > { %s2480_s23 = scalar_select %p44_p7, %s2387_s11, %s46_s18  }
  0x10   : > { %p2482_p11 = por %p119_p10, %p59_p3  ;;  %s146_s25 = sand.u32 1, %s2387_s11  }
  0x11   : > { %s1972_s26 = sshll.u32 %s146_s25, 7  ;;  %s2081_s27 = sshll.u32 %s2395_s13, 11 }
  0x12   : > { %s159_s30 = scalar_lea.hbm %s2884_s0, %s2081_s27  ;;  %s150_s3 = scalar_lea.vmem [#allocation2], %s1972_s26 }
  0x13   : > { %s160_s4 = sshll.u32 %s150_s3, 4  ;;  %p2495_p0 = pnand %p2217_p13, %p2465_p4  ;;  %s161_s4 = int_to_ptr.vmem [resolvable:$true] %s160_s4 }
  0x14   : > { %p1975_p1 = scmp.ge.s32.totalorder %s2399_s14, 1  ;;  %s147_s6 = scalar_lea.sflag [#allocation3], %s146_s25 }
  0x15   : > { %p2293_p2 = pneg %p2495_p0  ;;  %s2304_s7 = scalar_lea.vmem %s161_s4, 2048 }
  0x16   : > { %p2305_p3 = scmp.ne.s32.totalorder %s161_s4, %s2304_s7  ;;  %s2401_s8 = smov [#allocation2]  }
  0x17   : > { %s2309_s15 = sshll.u32 %s2401_s8, 4  ;;  %s2310_s15 = int_to_ptr.vmem [resolvable:$false] %s2309_s15 }
  0x18   : > { %p2307_p5 = pnand %p2305_p3, %p2293_p2  ;;  %s2311_s16 = scalar_lea.vmem %s2310_s15, 4096 }
  0x19   : > { %p2312_p7 = scmp.lt.s32.totalorder %s161_s4, %s2310_s15  ;;  %p2313_p10 = scmp.lt.s32.totalorder %s2311_s16, %s2304_s7 }
  0x1a   : > { %p2308_p6 = pneg %p2307_p5 }
  0x1b   : > { %p2314_p12 = por %p2313_p10, %p2312_p7 }
  0x1d   : > { %p2315_p4 = pnand %p2314_p12, %p2308_p6 }
  0x1f   : > { %2318 = shalt.err (!%p2315_p4)
}
  0x20   : > { %s2402_s18 = smov 64   ;;  %s2403_s19 = smov 4  }
  0x21   : > { %2212 = dma.hbm_to_vmem [thread:$0]  (!%p2495_p0), %s159_s30, 2048, %s161_s4, %s147_s6, %s2402_s18, %s2402_s18, %s2403_s19  }
  0x22   : > { %p168_p13 = scmp.lt.s32.totalorder %s2399_s14, 3 }
  0x24   : > { %p169_p2 = pnand %p1975_p1, %p168_p13 }
  0x25   : > { %s2508_s20 = sand.u32 (!%p169_p2), 1, %s2383_s10  }
  0x26   : > { %172 = sbr.rel (%p169_p2) target bundleno = 476 (0x1dc), region = 28  ;;  %s1976_s25 = sshll.u32 (!%p169_p2), %s2508_s20, 7 }
  0x27   : > { %s175_s26 = scalar_lea.sflag (!%p169_p2), [#allocation3], %s2508_s20  ;;  %s2512_s27 = scalar_lea.vmem (!%p169_p2), [#allocation2], %s1976_s25 }
  0x2b   : > { %2370 = dma.done.wait (%p2471_p8), %s175_s26, 2048  }
  0x2c   : > { %2372 = vsyncadd (%p2471_p8), %s175_s26, 4294965248  ;;  %vm386_vm0 = vcmask 1044480   ;;  %vm387_vm1 = vcmask 1045504   ;;  %v2404_v0 = vmov 65535   ;;  %v2273_v3 = vld [vmem:[%s2885_s1 + $0x8] sm:$0x3f]   ;;  %v655_v24 = vlaneseq }
  0x2d   : > { %v388_v1 = vsel %vm386_vm0, 4294967295, %v2404_v0  ;;  %v2274_v4 = vld [vmem:[%s2885_s1] sm:$0xff]   ;;  %vm337_vm2 = vcmask 220160   ;;  %v2277_v8 = vld [vmem:[%s2512_s27 + $0x8] sm:$0xff]   ;;  %v2279_v10 = vld [vmem:[%s2512_s27 + $0x10] sm:$0xff]   ;;  %vm586_vm3 = vcmask 64512  }
  0x2e   : > { %v389_v2 = vsel %vm387_vm1, %v388_v1, 0  ;;  %v2275_v6 = vld [vmem:[%s2512_s27] sm:$0xff]   ;;  %v2278_v9 = vld [vmem:[%s2512_s27 + $0x48] sm:$0xff]   ;;  %v2280_v11 = vld [vmem:[%s2512_s27 + $0x50] sm:$0xff]   ;;  %v2405_v22 = vmov 1983009808  }
  0x2f   : > { %v391_v5 = vand.u32 %v2273_v3, %v389_v2  ;;  %v2276_v7 = vld [vmem:[%s2512_s27 + $0x40] sm:$0xff]   ;;  %2169 = vmatprep.mubr.msk.bf16.mxu0 %vm337_vm2, %v2275_v6  ;;  %v2281_v12 = vld [vmem:[%s2512_s27 + $0x18] sm:$0xff]   ;;  %v2285_v16 = vld [vmem:[%s2512_s27 + $0x28] sm:$0xff]   ;;  %v653_v23 = vunpack.c.l.s4 %v2405_v22  ;;  %v656_v28 = vshrl.u32 %v655_v24, 7  ;;  %vm987_vm4 = vcmask 58368   ;;  %s1977_s21 = sshll.u32 %s2508_s20, 5 }
  0x30   : > { %2185 = vmatprep.mubr.msk.bf16.mxu1 %vm337_vm2, %v2276_v7  ;;  %v2282_v13 = vld [vmem:[%s2512_s27 + $0x58] sm:$0xff]   ;;  %v2283_v14 = vld [vmem:[%s2512_s27 + $0x20] sm:$0xff]   ;;  %v2286_v17 = vld [vmem:[%s2512_s27 + $0x68] sm:$0xff]   ;;  %vm1756_vm5 = vcmask 1041409   ;;  %vm1758_vm6 = vcmask 1042434   ;;  %vm1760_vm7 = vcmask 1043459  }
  0x31   : > { %2165 = vmatprep.subr.bf16.mxu0 %v391_v5  ;;  %2201 = vmatprep.subr.bf16.mxu1 %v391_v5  ;;  %v2284_v15 = vld [vmem:[%s2512_s27 + $0x60] sm:$0xff]   ;;  %v2287_v18 = vld [vmem:[%s2512_s27 + $0x30] sm:$0xff]   ;;  %v2289_v20 = vld [vmem:[%s2512_s27 + $0x38] sm:$0xff]   ;;  %v654_v27 = vunpack.c.0.s8 %v653_v23  ;;  %vm1762_vm8 = vcmask 1044484   ;;  %vm1764_vm9 = vcmask 1045509   ;;  %vm1766_vm10 = vcmask 1046534  }
  0x32   : > { %2166 = vmatpush3.bf16.msra.mxu0 %v391_v5  ;;  %2203 = vmatpush3.bf16.msra.mxu1 %v391_v5  ;;  %v2288_v19 = vld [vmem:[%s2512_s27 + $0x70] sm:$0xff]   ;;  %v2290_v21 = vld [vmem:[%s2512_s27 + $0x78] sm:$0xff]   ;;  %vm1768_vm11 = vcmask 1047559   ;;  %vm1835_vm12 = vcmask 60416   ;;  %s2638_s4 = scalar_lea.vmem [#allocation5], %s1977_s21  ;;  %s2146_s5 = sshll.u32 %s2391_s12, 9 }
  0x33   : > { %2167 = vmatprep.subr.bf16.mxu0 %v2274_v4  ;;  %2202 = vmatprep.subr.bf16.mxu1 %v2274_v4  ;;  %v2558_v37 = vsub.s32 %v654_v27, %v656_v28  ;;  %s1861_s6 = sshll.u32 %s2638_s4, 4  ;;  %s2832_s15 = scalar_lea.hbm %s2886_s2, %s2146_s5  ;;  %s2834_s6 = int_to_ptr.vmem [resolvable:$true] %s1861_s6 }
  0x34   : > { %s1845_s12 = scalar_lea.sflag [#allocation4], %s2508_s20  ;;  %s2319_s16 = scalar_lea.vmem %s2834_s6, 512 }
  0x35   : > { %p2320_p8 = scmp.ne.s32.totalorder %s2834_s6, %s2319_s16  ;;  %s2406_s18 = smov [#allocation5]  }
  0x36   : > { %2168 = vmatpush3.bf16.msra.mxu0 %v2274_v4  ;;  %2204 = vmatpush3.bf16.msra.mxu1 %v2274_v4  ;;  %s2323_s19 = sshll.u32 %s2406_s18, 4  ;;  %s2324_s19 = int_to_ptr.vmem [resolvable:$false] %s2323_s19 }
  0x37   : > { %p2321_p12 = pnand %p2320_p8, %p2475_p9  ;;  %s2325_s25 = scalar_lea.vmem %s2324_s19, 1024 }
  0x38   : > { %p2326_p1 = scmp.lt.s32.totalorder %s2834_s6, %s2324_s19  ;;  %p2327_p3 = scmp.lt.s32.totalorder %s2325_s25, %s2319_s16 }
  0x39   : > { %2170 = vmatmul.mubr.msk.bf16.vlgmr.msra.gmra.mxu0 %vm337_vm2, %v2277_v8  ;;  %2186 = vmatmul.mubr.msk.bf16.vlgmr.msra.gmra.mxu1 %vm337_vm2, %v2278_v9  ;;  %p2322_p0 = pneg %p2321_p12 }
  0x3a   : > { %2173 = vmatprep.mubr.msk.bf16.mxu0 %vm337_vm2, %v2279_v10  ;;  %2189 = vmatprep.mubr.msk.bf16.mxu1 %vm337_vm2, %v2280_v11  ;;  %p2328_p5 = por %p2327_p3, %p2326_p1 }
  0x3c   : > { %p2329_p6 = pnand %p2328_p5, %p2322_p0 }
  0x41   : > { %2174 = vmatmul.mubr.msk.bf16.gmra.mxu0 %vm337_vm2, %v2281_v12  ;;  %2190 = vmatmul.mubr.msk.bf16.gmra.mxu1 %vm337_vm2, %v2282_v13 }
  0x42   : > { %2177 = vmatprep.mubr.msk.bf16.mxu0 %vm337_vm2, %v2283_v14  ;;  %2193 = vmatprep.mubr.msk.bf16.mxu1 %vm337_vm2, %v2284_v15 }
  0x49   : > { %2178 = vmatmul.mubr.msk.bf16.gmra.mxu0 %vm337_vm2, %v2285_v16  ;;  %2194 = vmatmul.mubr.msk.bf16.gmra.mxu1 %vm337_vm2, %v2286_v17 }
  0x4a   : > { %2181 = vmatprep.mubr.msk.bf16.mxu0 %vm337_vm2, %v2287_v18  ;;  %2197 = vmatprep.mubr.msk.bf16.mxu1 %vm337_vm2, %v2288_v19 }
  0x51   : > { %2182 = vmatmul.mubr.msk.bf16.gmra.mxu0 %vm337_vm2, %v2289_v20  ;;  %2198 = vmatmul.mubr.msk.bf16.gmra.mxu1 %vm337_vm2, %v2290_v21 }
  0xf9   : > { %v2171_v25 = vpop.f32.mrf.mxu0  ;;  %v2187_v26 = vpop.f32.mrf.mxu1 }
  0xfa   : > { %v556_v29 = vmax.f32 %v2171_v25, 0.0  ;;  %v572_v30 = vmax.f32 %v2187_v26, 0.0 }
  0xfb   : > { %v427_v31 = vpop.f32.mrf.mxu0  ;;  %v491_v32 = vpop.f32.mrf.mxu1 }
  0xfc   : > { %v554_v33 = vmax.f32 %v427_v31, 0.0  ;;  %v570_v34 = vmax.f32 %v491_v32, 0.0  ;;  %v588_v35 = vsel %vm586_vm3, %v556_v29, -inf  ;;  %v612_v36 = vsel %vm586_vm3, %v572_v30, -inf }
  0xfd   : > { %v2172_v38 = vpop.f32.mrf.mxu0  ;;  %v2188_v39 = vpop.f32.mrf.mxu1 }
  0xfe   : > { %v587_v40 = vsel %vm586_vm3, %v554_v33, -inf  ;;  %v611_v41 = vsel %vm586_vm3, %v570_v34, -inf  ;;  %v557_v42 = vmax.f32 %v2172_v38, 0.0  ;;  %v573_v43 = vmax.f32 %v2188_v39, 0.0 }
  0xff   : > { %v589_v44 = vmax.f32 %v587_v40, %v588_v35  ;;  %v613_v45 = vmax.f32 %v611_v41, %v612_v36  ;;  %v430_v46 = vpop.f32.mrf.mxu0  ;;  %v494_v47 = vpop.f32.mrf.mxu1 }
 0x100   : > { %v591_v48 = vsel %vm586_vm3, %v557_v42, -inf  ;;  %v2564_v49 = vsel %vm586_vm3, %v573_v43, -inf  ;;  %v555_v50 = vmax.f32 %v430_v46, 0.0  ;;  %v571_v51 = vmax.f32 %v494_v47, 0.0 }
 0x101   : > { %v651_v52 = vcombine.high %v589_v44, %v589_v44  ;;  %v658_v53 = vrot.slane %v589_v44, %v2558_v37  ;;  %v787_v54 = vcombine.high %v613_v45, %v613_v45  ;;  %v794_v55 = vrot.slane %v613_v45, %v2558_v37  ;;  %v2568_v56 = vpop.f32.mrf.mxu0  ;;  %v2570_v57 = vpop.f32.mrf.mxu1 }
 0x102   : > { %v590_v58 = vsel %vm586_vm3, %v555_v50, -inf  ;;  %v2574_v59 = vsel %vm586_vm3, %v571_v51, -inf  ;;  %v560_v60 = vmax.f32 %v2568_v56, 0.0  ;;  %v576_v61 = vmax.f32 %v2570_v57, 0.0 }
 0x103   : > { %v665_v62 = vrot.slane %v651_v52, %v2558_v37  ;;  %v666_v63 = vcombine.high %v658_v53, %v658_v53  ;;  %v988_v0 = vsel %vm987_vm4, %v658_v53, -inf  ;;  %v801_v1 = vrot.slane %v787_v54, %v2558_v37 }
 0x104   : > { %v989_v2 = vrot.slane %v988_v0, 4  ;;  %v802_v3 = vcombine.high %v794_v55, %v794_v55  ;;  %v1212_v4 = vsel %vm987_vm4, %v794_v55, -inf  ;;  %v2582_v5 = vmax.f32 %v590_v58, %v591_v48 }
 0x105   : > { %v667_v6 = vcombine.high %v665_v62, %v665_v62  ;;  %v995_v7 = vsel %vm987_vm4, %v666_v63, -inf  ;;  %v1002_v8 = vsel %vm987_vm4, %v665_v62, -inf  ;;  %v803_v9 = vcombine.high %v801_v1, %v801_v1 }
 0x106   : > { %v990_v10 = vmax.f32 %v988_v0, %v989_v2  ;;  %v996_v11 = vrot.slane %v995_v7, 4  ;;  %v1003_v12 = vrot.slane %v1002_v8, 4  ;;  %v1213_v13 = vrot.slane %v1212_v4, 4 }
 0x107   : > { %v1009_v14 = vsel %vm987_vm4, %v667_v6, -inf  ;;  %v1219_v15 = vsel %vm987_vm4, %v802_v3, -inf  ;;  %v1226_v16 = vsel %vm987_vm4, %v801_v1, -inf  ;;  %v1233_v17 = vsel %vm987_vm4, %v803_v9, -inf }
 0x108   : > { %v991_v18 = vrot.slane %v990_v10, 2  ;;  %v997_v19 = vmax.f32 %v995_v7, %v996_v11  ;;  %v1004_v20 = vmax.f32 %v1002_v8, %v1003_v12  ;;  %v1010_v21 = vrot.slane %v1009_v14, 4 }
 0x109   : > { %v1214_v22 = vmax.f32 %v1212_v4, %v1213_v13  ;;  %v1220_v23 = vrot.slane %v1219_v15, 4  ;;  %v1227_v24 = vrot.slane %v1226_v16, 4  ;;  %v1234_v25 = vrot.slane %v1233_v17, 4 }
 0x10a   : > { %v992_v26 = vmax.f32 %v990_v10, %v991_v18  ;;  %v998_v27 = vrot.slane %v997_v19, 2  ;;  %v1005_v28 = vrot.slane %v1004_v20, 2  ;;  %v1011_v29 = vmax.f32 %v1009_v14, %v1010_v21 }
 0x10b   : > { %v1215_v30 = vrot.slane %v1214_v22, 2  ;;  %v1221_v31 = vmax.f32 %v1219_v15, %v1220_v23  ;;  %v1228_v32 = vmax.f32 %v1226_v16, %v1227_v24  ;;  %v1235_v33 = vmax.f32 %v1233_v17, %v1234_v25 }
 0x10c   : > { %v993_v34 = vrot.slane %v992_v26, 1  ;;  %v999_v35 = vmax.f32 %v997_v19, %v998_v27  ;;  %v1006_v36 = vmax.f32 %v1004_v20, %v1005_v28  ;;  %v1012_v38 = vrot.slane %v1011_v29, 2 }
 0x10d   : > { %v1216_v39 = vmax.f32 %v1214_v22, %v1215_v30  ;;  %v1222_v40 = vrot.slane %v1221_v31, 2  ;;  %v1229_v41 = vrot.slane %v1228_v32, 2  ;;  %v1236_v42 = vrot.slane %v1235_v33, 2 }
 0x10e   : > { %v994_v43 = vmax.f32 %v992_v26, %v993_v34  ;;  %v1000_v44 = vrot.slane %v999_v35, 1  ;;  %v1007_v45 = vrot.slane %v1006_v36, 1  ;;  %v1013_v46 = vmax.f32 %v1011_v29, %v1012_v38 }
 0x10f   : > { %v1217_v47 = vrot.slane %v1216_v39, 1  ;;  %v1223_v48 = vmax.f32 %v1221_v31, %v1222_v40  ;;  %v1230_v50 = vmax.f32 %v1228_v32, %v1229_v41  ;;  %v1237_v51 = vmax.f32 %v1235_v33, %v1236_v42 }
 0x110   : > { %v1001_v52 = vmax.f32 %v999_v35, %v1000_v44  ;;  %v1008_v53 = vmax.f32 %v1006_v36, %v1007_v45  ;;  %v1014_v54 = vrot.slane %v1013_v46, 1  ;;  %v2082_v55 = vpack.c.bf16 %v994_v43, %v994_v43 }
 0x111   : > { %v1218_v58 = vmax.f32 %v1216_v39, %v1217_v47  ;;  %v1224_v62 = vrot.slane %v1223_v48, 1  ;;  %v1231_v63 = vrot.slane %v1230_v50, 1  ;;  %v1238_v0 = vrot.slane %v1237_v51, 1 }
 0x112   : > { %v1015_v1 = vmax.f32 %v1013_v46, %v1014_v54  ;;  %v2083_v2 = vpack.c.bf16 %v1001_v52, %v1001_v52  ;;  %v2084_v3 = vpack.c.bf16 %v1008_v53, %v1008_v53  ;;  %v1692_v4 = vunpack.c.l.b16 %v2082_v55 }
 0x113   : > { %v1225_v6 = vmax.f32 %v1223_v48, %v1224_v62  ;;  %v1232_v7 = vmax.f32 %v1230_v50, %v1231_v63  ;;  %v1239_v8 = vmax.f32 %v1237_v51, %v1238_v0  ;;  %v2114_v9 = vpack.c.bf16 %v1218_v58, %v1218_v58 }
 0x114   : > { %v2085_v10 = vpack.c.bf16 %v1015_v1, %v1015_v1  ;;  %v1693_v11 = vunpack.c.l.b16 %v2083_v2  ;;  %v1694_v12 = vunpack.c.l.b16 %v2084_v3  ;;  %v668_v13 = vcombine.high %v2582_v5, %v2582_v5 }
 0x115   : > { %v2115_v14 = vpack.c.bf16 %v1225_v6, %v1225_v6  ;;  %v2116_v15 = vpack.c.bf16 %v1232_v7, %v1232_v7  ;;  %v2117_v16 = vpack.c.bf16 %v1239_v8, %v1239_v8  ;;  %v1724_v17 = vunpack.c.l.b16 %v2114_v9 }
 0x116   : > { %v1695_v18 = vunpack.c.l.b16 %v2085_v10  ;;  %v1757_v19 = vsel %vm1756_vm5, %v1693_v11, %v1692_v4  ;;  %v675_v20 = vrot.slane %v2582_v5, %v2558_v37  ;;  %v682_v21 = vrot.slane %v668_v13, %v2558_v37 }
 0x117   : > { %v1759_v22 = vsel %vm1758_vm6, %v1694_v12, %v1757_v19  ;;  %v1725_v23 = vunpack.c.l.b16 %v2115_v14  ;;  %v1726_v24 = vunpack.c.l.b16 %v2116_v15  ;;  %v1727_v25 = vunpack.c.l.b16 %v2117_v16  ;;  %v443_v15 = vpop.f32.mrf.mxu0 }
 0x118   : > { %v683_v26 = vcombine.high %v675_v20, %v675_v20  ;;  %v684_v27 = vcombine.high %v682_v21, %v682_v21  ;;  %v1016_v28 = vsel %vm987_vm4, %v675_v20, -inf  ;;  %v1030_v29 = vsel %vm987_vm4, %v682_v21, -inf }
 0x119   : > { %v1791_v30 = vsel %vm1756_vm5, %v1725_v23, %v1724_v17  ;;  %v1017_v31 = vrot.slane %v1016_v28, 4  ;;  %v1031_v32 = vrot.slane %v1030_v29, 4  ;;  %v2601_v33 = vsel %vm1760_vm7, %v1695_v18, %v1759_v22 }
 0x11a   : > { %v1792_v5 = vsel %vm1758_vm6, %v1726_v24, %v1791_v30  ;;  %v1023_v34 = vsel %vm987_vm4, %v683_v26, -inf  ;;  %v1037_v35 = vsel %vm987_vm4, %v684_v27, -inf  ;;  %v616_v36 = vmax.f32 %v2574_v59, %v2564_v49 }
 0x11b   : > { %v1018_v38 = vmax.f32 %v1016_v28, %v1017_v31  ;;  %v1024_v39 = vrot.slane %v1023_v34, 4  ;;  %v1032_v40 = vmax.f32 %v1030_v29, %v1031_v32  ;;  %v1038_v41 = vrot.slane %v1037_v35, 4  ;;  %v507_v32 = vpop.f32.mrf.mxu1 }
 0x11c   : > { %v804_v42 = vcombine.high %v616_v36, %v616_v36  ;;  %v811_v43 = vrot.slane %v616_v36, %v2558_v37  ;;  %v2610_v44 = vsel %vm1760_vm7, %v1727_v25, %v1792_v5  ;;  %v2615_v45 = vsel %vm586_vm3, %v560_v60, -inf  ;;  %v2176_v5 = vpop.f32.mrf.mxu0 }
 0x11d   : > { %v1019_v46 = vrot.slane %v1018_v38, 2  ;;  %v1025_v47 = vmax.f32 %v1023_v34, %v1024_v39  ;;  %v1033_v48 = vrot.slane %v1032_v40, 2  ;;  %v1039_v50 = vmax.f32 %v1037_v35, %v1038_v41 }
 0x11e   : > { %v818_v49 = vrot.slane %v804_v42, %v2558_v37  ;;  %v819_v59 = vcombine.high %v811_v43, %v811_v43  ;;  %v1240_v51 = vsel %vm987_vm4, %v811_v43, -inf  ;;  %v2622_v52 = vsel %vm586_vm3, %v576_v61, -inf }
 0x11f   : > { %v1020_v53 = vmax.f32 %v1018_v38, %v1019_v46  ;;  %v1026_v56 = vrot.slane %v1025_v47, 2  ;;  %v1034_v54 = vmax.f32 %v1032_v40, %v1033_v48  ;;  %v1040_v60 = vrot.slane %v1039_v50, 2 }
 0x120   : > { %v820_v55 = vcombine.high %v818_v49, %v818_v49  ;;  %v1241_v58 = vrot.slane %v1240_v51, 4  ;;  %v1247_v62 = vsel %vm987_vm4, %v819_v59, -inf  ;;  %v1254_v63 = vsel %vm987_vm4, %v818_v49, -inf }
 0x121   : > { %v1021_v0 = vrot.slane %v1020_v53, 1  ;;  %v1027_v1 = vmax.f32 %v1025_v47, %v1026_v56  ;;  %v1035_v2 = vrot.slane %v1034_v54, 1  ;;  %v1041_v3 = vmax.f32 %v1039_v50, %v1040_v60 }
 0x122   : > { %v1242_v57 = vmax.f32 %v1240_v51, %v1241_v58  ;;  %v1248_v61 = vrot.slane %v1247_v62, 4  ;;  %v1255_v4 = vrot.slane %v1254_v63, 4  ;;  %v1261_v6 = vsel %vm987_vm4, %v820_v55, -inf }
 0x123   : > { %v1022_v7 = vmax.f32 %v1020_v53, %v1021_v0  ;;  %v1028_v8 = vrot.slane %v1027_v1, 1  ;;  %v1036_v9 = vmax.f32 %v1034_v54, %v1035_v2  ;;  %v1042_v10 = vrot.slane %v1041_v3, 1 }
 0x124   : > { %v1243_v11 = vrot.slane %v1242_v57, 2  ;;  %v1249_v12 = vmax.f32 %v1247_v62, %v1248_v61  ;;  %v1256_v13 = vmax.f32 %v1254_v63, %v1255_v4  ;;  %v1262_v14 = vrot.slane %v1261_v6, 4 }
 0x125   : > { %v1029_v16 = vmax.f32 %v1027_v1, %v1028_v8  ;;  %v1043_v17 = vmax.f32 %v1041_v3, %v1042_v10  ;;  %v2086_v18 = vpack.c.bf16 %v1022_v7, %v1022_v7  ;;  %v2088_v19 = vpack.c.bf16 %v1036_v9, %v1036_v9 }
 0x126   : > { %v1244_v20 = vmax.f32 %v1242_v57, %v1243_v11  ;;  %v1250_v21 = vrot.slane %v1249_v12, 2  ;;  %v1257_v22 = vrot.slane %v1256_v13, 2  ;;  %v1263_v23 = vmax.f32 %v1261_v6, %v1262_v14 }
 0x127   : > { %v2087_v24 = vpack.c.bf16 %v1029_v16, %v1029_v16  ;;  %v2089_v25 = vpack.c.bf16 %v1043_v17, %v1043_v17  ;;  %v1696_v26 = vunpack.c.l.b16 %v2086_v18  ;;  %v1698_v27 = vunpack.c.l.b16 %v2088_v19 }
 0x128   : > { %v1245_v28 = vrot.slane %v1244_v20, 1  ;;  %v1251_v29 = vmax.f32 %v1249_v12, %v1250_v21  ;;  %v1258_v30 = vmax.f32 %v1256_v13, %v1257_v22  ;;  %v1264_v31 = vrot.slane %v1263_v23, 2 }
 0x129   : > { %v1697_v34 = vunpack.c.l.b16 %v2087_v24  ;;  %v1699_v35 = vunpack.c.l.b16 %v2089_v25  ;;  %v1763_v36 = vsel %vm1762_vm8, %v1696_v26, %v2601_v33  ;;  %v558_v38 = vmax.f32 %v443_v15, 0.0 }
 0x12a   : > { %v1246_v39 = vmax.f32 %v1244_v20, %v1245_v28  ;;  %v1252_v40 = vrot.slane %v1251_v29, 1  ;;  %v1259_v41 = vrot.slane %v1258_v30, 1  ;;  %v1265_v42 = vmax.f32 %v1263_v23, %v1264_v31 }
 0x12b   : > { %v1765_v43 = vsel %vm1764_vm9, %v1697_v34, %v1763_v36  ;;  %v593_v46 = vsel %vm586_vm3, %v558_v38, -inf  ;;  %v574_v47 = vmax.f32 %v507_v32, 0.0  ;;  %v561_v48 = vmax.f32 %v2176_v5, 0.0 }
 0x12c   : > { %v1767_v50 = vsel %vm1766_vm10, %v1698_v27, %v1765_v43  ;;  %v1253_v49 = vmax.f32 %v1251_v29, %v1252_v40  ;;  %v1260_v59 = vmax.f32 %v1258_v30, %v1259_v41  ;;  %v1266_v51 = vrot.slane %v1265_v42, 1 }
 0x12d   : > { %v1769_v53 = vsel %vm1768_vm11, %v1699_v35, %v1767_v50  ;;  %v2118_v33 = vpack.c.bf16 %v1246_v39, %v1246_v39  ;;  %v595_v56 = vmax.f32 %v593_v46, %v2615_v45  ;;  %v617_v54 = vsel %vm586_vm3, %v574_v47, -inf }
 0x12e   : > { %v1819_v60 = vpack.c.b16 %v1769_v53, %v1769_v53  ;;  %v1267_v55 = vmax.f32 %v1265_v42, %v1266_v51  ;;  %v2119_v58 = vpack.c.bf16 %v1253_v49, %v1253_v49  ;;  %v2120_v62 = vpack.c.bf16 %v1260_v59, %v1260_v59 }
 0x12f   : > { %v1728_v63 = vunpack.c.l.b16 %v2118_v33  ;;  %v685_v0 = vcombine.high %v595_v56, %v595_v56  ;;  %v692_v1 = vrot.slane %v595_v56, %v2558_v37  ;;  %v619_v2 = vmax.f32 %v617_v54, %v2622_v52 }
 0x130   : > { %1836 = vst.msk [vmem:[%s2638_s4] sm:$0xf] %vm1835_vm12, %v1819_v60  ;;  %v2121_v3 = vpack.c.bf16 %v1267_v55, %v1267_v55  ;;  %v1729_v57 = vunpack.c.l.b16 %v2119_v58  ;;  %v1730_v45 = vunpack.c.l.b16 %v2120_v62  ;;  %v2643_v61 = vsel %vm586_vm3, %v561_v48, -inf  ;;  %v2192_v55 = vpop.f32.mrf.mxu1 }
 0x131   : > { %v1794_v4 = vsel %vm1762_vm8, %v1728_v63, %v2610_v44  ;;  %v699_v6 = vrot.slane %v685_v0, %v2558_v37  ;;  %v700_v7 = vcombine.high %v692_v1, %v692_v1  ;;  %v1044_v8 = vsel %vm987_vm4, %v692_v1, -inf }
 0x132   : > { %v1731_v52 = vunpack.c.l.b16 %v2121_v3  ;;  %v1795_v9 = vsel %vm1764_vm9, %v1729_v57, %v1794_v4  ;;  %v1045_v10 = vrot.slane %v1044_v8, 4  ;;  %v821_v11 = vcombine.high %v619_v2, %v619_v2 }
 0x133   : > { %v1796_v12 = vsel %vm1766_vm10, %v1730_v45, %v1795_v9  ;;  %v701_v13 = vcombine.high %v699_v6, %v699_v6  ;;  %v1051_v14 = vsel %vm987_vm4, %v700_v7, -inf  ;;  %v1058_v15 = vsel %vm987_vm4, %v699_v6, -inf  ;;  %v446_v45 = vpop.f32.mrf.mxu0 }
 0x134   : > { %v1797_v44 = vsel %vm1768_vm11, %v1731_v52, %v1796_v12  ;;  %v1046_v16 = vmax.f32 %v1044_v8, %v1045_v10  ;;  %v1052_v17 = vrot.slane %v1051_v14, 4  ;;  %v1059_v18 = vrot.slane %v1058_v15, 4  ;;  %v510_v12 = vpop.f32.mrf.mxu1 }
 0x135   : > { %v1823_v19 = vpack.c.b16 %v1797_v44, %v1797_v44  ;;  %v1065_v20 = vsel %vm987_vm4, %v701_v13, -inf  ;;  %v828_v21 = vrot.slane %v619_v2, %v2558_v37  ;;  %v835_v22 = vrot.slane %v821_v11, %v2558_v37 }
 0x136   : > { %v1047_v23 = vrot.slane %v1046_v16, 2  ;;  %v1053_v24 = vmax.f32 %v1051_v14, %v1052_v17  ;;  %v1060_v25 = vmax.f32 %v1058_v15, %v1059_v18  ;;  %v1066_v26 = vrot.slane %v1065_v20, 4 }
 0x137   : > { %1840 = vst.msk [vmem:[%s2638_s4 + $0x10] sm:$0xf] %vm1835_vm12, %v1823_v19  ;;  %v836_v27 = vcombine.high %v828_v21, %v828_v21  ;;  %v837_v28 = vcombine.high %v835_v22, %v835_v22  ;;  %v1268_v29 = vsel %vm987_vm4, %v828_v21, -inf  ;;  %v1282_v30 = vsel %vm987_vm4, %v835_v22, -inf }
 0x138   : > { %v1048_v31 = vmax.f32 %v1046_v16, %v1047_v23  ;;  %v1054_v32 = vrot.slane %v1053_v24, 2  ;;  %v1061_v5 = vrot.slane %v1060_v25, 2  ;;  %v1067_v34 = vmax.f32 %v1065_v20, %v1066_v26  ;;  %v2179_v20 = vpop.f32.mrf.mxu0 }
 0x139   : > { %v1269_v35 = vrot.slane %v1268_v29, 4  ;;  %v1275_v36 = vsel %vm987_vm4, %v836_v27, -inf  ;;  %v1283_v38 = vrot.slane %v1282_v30, 4  ;;  %v1289_v39 = vsel %vm987_vm4, %v837_v28, -inf }
 0x13a   : > { %v1049_v40 = vrot.slane %v1048_v31, 1  ;;  %v1055_v41 = vmax.f32 %v1053_v24, %v1054_v32  ;;  %v1062_v42 = vmax.f32 %v1060_v25, %v1061_v5  ;;  %v1068_v43 = vrot.slane %v1067_v34, 2 }
 0x13b   : > { %v1270_v46 = vmax.f32 %v1268_v29, %v1269_v35  ;;  %v1276_v47 = vrot.slane %v1275_v36, 4  ;;  %v1284_v48 = vmax.f32 %v1282_v30, %v1283_v38  ;;  %v1290_v50 = vrot.slane %v1289_v39, 4  ;;  %v2195_v29 = vpop.f32.mrf.mxu1 }
 0x13c   : > { %v1050_v49 = vmax.f32 %v1048_v31, %v1049_v40  ;;  %v1056_v59 = vrot.slane %v1055_v41, 1  ;;  %v1063_v51 = vrot.slane %v1062_v42, 1  ;;  %v1069_v53 = vmax.f32 %v1067_v34, %v1068_v43 }
 0x13d   : > { %v1271_v33 = vrot.slane %v1270_v46, 2  ;;  %v1277_v56 = vmax.f32 %v1275_v36, %v1276_v47  ;;  %v1285_v54 = vrot.slane %v1284_v48, 2  ;;  %v1291_v60 = vmax.f32 %v1289_v39, %v1290_v50  ;;  %v459_v39 = vpop.f32.mrf.mxu0 }
 0x13e   : > { %v1057_v58 = vmax.f32 %v1055_v41, %v1056_v59  ;;  %v1064_v62 = vmax.f32 %v1062_v42, %v1063_v51  ;;  %v1070_v63 = vrot.slane %v1069_v53, 1  ;;  %v2090_v0 = vpack.c.bf16 %v1050_v49, %v1050_v49 }
 0x13f   : > { %v1272_v1 = vmax.f32 %v1270_v46, %v1271_v33  ;;  %v1278_v2 = vrot.slane %v1277_v56, 2  ;;  %v1286_v3 = vmax.f32 %v1284_v48, %v1285_v54  ;;  %v1292_v57 = vrot.slane %v1291_v60, 2 }
 0x140   : > { %v1071_v4 = vmax.f32 %v1069_v53, %v1070_v63  ;;  %v2091_v6 = vpack.c.bf16 %v1057_v58, %v1057_v58  ;;  %v2092_v7 = vpack.c.bf16 %v1064_v62, %v1064_v62  ;;  %v1700_v8 = vunpack.c.l.b16 %v2090_v0 }
 0x141   : > { %v1273_v52 = vrot.slane %v1272_v1, 1  ;;  %v1279_v9 = vmax.f32 %v1277_v56, %v1278_v2  ;;  %v1287_v10 = vrot.slane %v1286_v3, 1  ;;  %v1293_v11 = vmax.f32 %v1291_v60, %v1292_v57 }
 0x142   : > { %v2093_v13 = vpack.c.bf16 %v1071_v4, %v1071_v4  ;;  %v1701_v14 = vunpack.c.l.b16 %v2091_v6  ;;  %v1702_v15 = vunpack.c.l.b16 %v2092_v7  ;;  %v577_v44 = vmax.f32 %v2192_v55, 0.0 }
 0x143   : > { %v1274_v16 = vmax.f32 %v1272_v1, %v1273_v52  ;;  %v1280_v17 = vrot.slane %v1279_v9, 1  ;;  %v1288_v18 = vmax.f32 %v1286_v3, %v1287_v10  ;;  %v1294_v19 = vrot.slane %v1293_v11, 1 }
 0x144   : > { %v1703_v21 = vunpack.c.l.b16 %v2093_v13  ;;  %v1770_v22 = vsel %vm1756_vm5, %v1701_v14, %v1700_v8  ;;  %v621_v23 = vsel %vm586_vm3, %v577_v44, -inf  ;;  %v559_v24 = vmax.f32 %v446_v45, 0.0 }
 0x145   : > { %v1771_v25 = vsel %vm1758_vm6, %v1702_v15, %v1770_v22  ;;  %v1281_v26 = vmax.f32 %v1279_v9, %v1280_v17  ;;  %v1295_v27 = vmax.f32 %v1293_v11, %v1294_v19  ;;  %v2122_v28 = vpack.c.bf16 %v1274_v16, %v1274_v16 }
 0x146   : > { %v2124_v30 = vpack.c.bf16 %v1288_v18, %v1288_v18  ;;  %v596_v31 = vsel %vm586_vm3, %v559_v24, -inf  ;;  %v2668_v32 = vsel %vm1760_vm7, %v1703_v21, %v1771_v25  ;;  %v575_v5 = vmax.f32 %v510_v12, 0.0 }
 0x147   : > { %v2123_v34 = vpack.c.bf16 %v1281_v26, %v1281_v26  ;;  %v2125_v35 = vpack.c.bf16 %v1295_v27, %v1295_v27  ;;  %v1732_v36 = vunpack.c.l.b16 %v2122_v28  ;;  %v598_v38 = vmax.f32 %v596_v31, %v2643_v61 }
 0x148   : > { %v1734_v40 = vunpack.c.l.b16 %v2124_v30  ;;  %v620_v41 = vsel %vm586_vm3, %v575_v5, -inf  ;;  %v564_v42 = vmax.f32 %v2179_v20, 0.0  ;;  %v580_v43 = vmax.f32 %v2195_v29, 0.0 }
 0x149   : > { %v1733_v46 = vunpack.c.l.b16 %v2123_v34  ;;  %v1735_v47 = vunpack.c.l.b16 %v2125_v35  ;;  %v702_v48 = vcombine.high %v598_v38, %v598_v38  ;;  %v709_v50 = vrot.slane %v598_v38, %v2558_v37 }
 0x14a   : > { %v622_v49 = vmax.f32 %v620_v41, %v621_v23  ;;  %v2674_v59 = vsel %vm586_vm3, %v564_v42, -inf  ;;  %v2677_v51 = vsel %vm586_vm3, %v580_v43, -inf  ;;  %v562_v53 = vmax.f32 %v459_v39, 0.0 }
 0x14b   : > { %v1798_v61 = vsel %vm1756_vm5, %v1733_v46, %v1732_v36  ;;  %v716_v33 = vrot.slane %v702_v48, %v2558_v37  ;;  %v717_v56 = vcombine.high %v709_v50, %v709_v50  ;;  %v1072_v54 = vsel %vm987_vm4, %v709_v50, -inf }
 0x14c   : > { %v1799_v60 = vsel %vm1758_vm6, %v1734_v40, %v1798_v61  ;;  %v1073_v55 = vrot.slane %v1072_v54, 4  ;;  %v838_v58 = vcombine.high %v622_v49, %v622_v49  ;;  %v845_v62 = vrot.slane %v622_v49, %v2558_v37 }
 0x14d   : > { %v718_v63 = vcombine.high %v716_v33, %v716_v33  ;;  %v1079_v0 = vsel %vm987_vm4, %v717_v56, -inf  ;;  %v1086_v1 = vsel %vm987_vm4, %v716_v33, -inf  ;;  %v2687_v2 = vsel %vm1760_vm7, %v1735_v47, %v1799_v60 }
 0x14e   : > { %v1074_v3 = vmax.f32 %v1072_v54, %v1073_v55  ;;  %v1080_v57 = vrot.slane %v1079_v0, 4  ;;  %v1087_v45 = vrot.slane %v1086_v1, 4  ;;  %v852_v4 = vrot.slane %v838_v58, %v2558_v37 }
 0x14f   : > { %v1093_v6 = vsel %vm987_vm4, %v718_v63, -inf  ;;  %v853_v7 = vcombine.high %v845_v62, %v845_v62  ;;  %v1296_v8 = vsel %vm987_vm4, %v845_v62, -inf  ;;  %v599_v52 = vsel %vm586_vm3, %v562_v53, -inf  ;;  %v523_v63 = vpop.f32.mrf.mxu1 }
 0x150   : > { %v1075_v9 = vrot.slane %v1074_v3, 2  ;;  %v1081_v10 = vmax.f32 %v1079_v0, %v1080_v57  ;;  %v1088_v11 = vmax.f32 %v1086_v1, %v1087_v45  ;;  %v1094_v12 = vrot.slane %v1093_v6, 4 }
 0x151   : > { %v854_v13 = vcombine.high %v852_v4, %v852_v4  ;;  %v1297_v14 = vrot.slane %v1296_v8, 4  ;;  %v1303_v15 = vsel %vm987_vm4, %v853_v7, -inf  ;;  %v1310_v44 = vsel %vm987_vm4, %v852_v4, -inf }
 0x152   : > { %v1076_v16 = vmax.f32 %v1074_v3, %v1075_v9  ;;  %v1082_v17 = vrot.slane %v1081_v10, 2  ;;  %v1089_v18 = vrot.slane %v1088_v11, 2  ;;  %v1095_v19 = vmax.f32 %v1093_v6, %v1094_v12 }
 0x153   : > { %v1298_v20 = vmax.f32 %v1296_v8, %v1297_v14  ;;  %v1304_v21 = vrot.slane %v1303_v15, 4  ;;  %v1311_v22 = vrot.slane %v1310_v44, 4  ;;  %v1317_v23 = vsel %vm987_vm4, %v854_v13, -inf }
 0x154   : > { %v1077_v24 = vrot.slane %v1076_v16, 1  ;;  %v1083_v25 = vmax.f32 %v1081_v10, %v1082_v17  ;;  %v1090_v26 = vmax.f32 %v1088_v11, %v1089_v18  ;;  %v1096_v27 = vrot.slane %v1095_v19, 2 }
 0x155   : > { %v1299_v28 = vrot.slane %v1298_v20, 2  ;;  %v1305_v29 = vmax.f32 %v1303_v15, %v1304_v21  ;;  %v1312_v30 = vmax.f32 %v1310_v44, %v1311_v22  ;;  %v1318_v31 = vrot.slane %v1317_v23, 4 }
 0x156   : > { %v1078_v5 = vmax.f32 %v1076_v16, %v1077_v24  ;;  %v1084_v34 = vrot.slane %v1083_v25, 1  ;;  %v1091_v35 = vrot.slane %v1090_v26, 1  ;;  %v1097_v36 = vmax.f32 %v1095_v19, %v1096_v27 }
 0x157   : > { %v1300_v38 = vmax.f32 %v1298_v20, %v1299_v28  ;;  %v1306_v39 = vrot.slane %v1305_v29, 2  ;;  %v1313_v40 = vrot.slane %v1312_v30, 2  ;;  %v1319_v41 = vmax.f32 %v1317_v23, %v1318_v31  ;;  %v2180_v28 = vpop.f32.mrf.mxu0 }
 0x158   : > { %v1085_v42 = vmax.f32 %v1083_v25, %v1084_v34  ;;  %v1092_v43 = vmax.f32 %v1090_v26, %v1091_v35  ;;  %v1098_v46 = vrot.slane %v1097_v36, 1  ;;  %v2094_v47 = vpack.c.bf16 %v1078_v5, %v1078_v5 }
 0x159   : > { %v1301_v48 = vrot.slane %v1300_v38, 1  ;;  %v1307_v50 = vmax.f32 %v1305_v29, %v1306_v39  ;;  %v1314_v49 = vmax.f32 %v1312_v30, %v1313_v40  ;;  %v1320_v53 = vrot.slane %v1319_v41, 2 }
 0x15a   : > { %v1099_v61 = vmax.f32 %v1097_v36, %v1098_v46  ;;  %v2095_v33 = vpack.c.bf16 %v1085_v42, %v1085_v42  ;;  %v2096_v56 = vpack.c.bf16 %v1092_v43, %v1092_v43  ;;  %v1704_v54 = vunpack.c.l.b16 %v2094_v47 }
 0x15b   : > { %v1302_v60 = vmax.f32 %v1300_v38, %v1301_v48  ;;  %v1308_v55 = vrot.slane %v1307_v50, 1  ;;  %v1315_v58 = vrot.slane %v1314_v49, 1  ;;  %v1321_v62 = vmax.f32 %v1319_v41, %v1320_v53  ;;  %v2717_v48 = vpop.f32.mrf.mxu1 }
 0x15c   : > { %v2097_v0 = vpack.c.bf16 %v1099_v61, %v1099_v61  ;;  %v1705_v1 = vunpack.c.l.b16 %v2095_v33  ;;  %v1706_v3 = vunpack.c.l.b16 %v2096_v56  ;;  %v1773_v57 = vsel %vm1762_vm8, %v1704_v54, %v2668_v32 }
 0x15d   : > { %v1309_v45 = vmax.f32 %v1307_v50, %v1308_v55  ;;  %v1316_v4 = vmax.f32 %v1314_v49, %v1315_v58  ;;  %v1322_v6 = vrot.slane %v1321_v62, 1  ;;  %v2126_v7 = vpack.c.bf16 %v1302_v60, %v1302_v60 }
 0x15e   : > { %v1707_v8 = vunpack.c.l.b16 %v2097_v0  ;;  %v1774_v9 = vsel %vm1764_vm9, %v1705_v1, %v1773_v57  ;;  %v601_v10 = vmax.f32 %v599_v52, %v2674_v59  ;;  %v578_v11 = vmax.f32 %v523_v63, 0.0 }
 0x15f   : > { %v1775_v12 = vsel %vm1766_vm10, %v1706_v3, %v1774_v9  ;;  %v1323_v13 = vmax.f32 %v1321_v62, %v1322_v6  ;;  %v2127_v14 = vpack.c.bf16 %v1309_v45, %v1309_v45  ;;  %v2128_v15 = vpack.c.bf16 %v1316_v4, %v1316_v4 }
 0x160   : > { %v1776_v44 = vsel %vm1768_vm11, %v1707_v8, %v1775_v12  ;;  %v1736_v16 = vunpack.c.l.b16 %v2126_v7  ;;  %v719_v32 = vcombine.high %v601_v10, %v601_v10  ;;  %v726_v17 = vrot.slane %v601_v10, %v2558_v37 }
 0x161   : > { %v1820_v18 = vpack.c.b16 %v1776_v44, %v1776_v44  ;;  %v2129_v19 = vpack.c.bf16 %v1323_v13, %v1323_v13  ;;  %v1737_v20 = vunpack.c.l.b16 %v2127_v14  ;;  %v1738_v21 = vunpack.c.l.b16 %v2128_v15 }
 0x162   : > { %v1801_v59 = vsel %vm1762_vm8, %v1736_v16, %v2687_v2  ;;  %v733_v52 = vrot.slane %v719_v32, %v2558_v37  ;;  %v734_v22 = vcombine.high %v726_v17, %v726_v17  ;;  %v1100_v23 = vsel %vm987_vm4, %v726_v17, -inf }
 0x163   : > { %1837 = vst.msk [vmem:[%s2638_s4 + $0x4] sm:$0xf] %vm1835_vm12, %v1820_v18  ;;  %v1739_v24 = vunpack.c.l.b16 %v2129_v19  ;;  %v1802_v25 = vsel %vm1764_vm9, %v1737_v20, %v1801_v59  ;;  %v1101_v26 = vrot.slane %v1100_v23, 4  ;;  %v623_v27 = vsel %vm586_vm3, %v578_v11, -inf  ;;  %v462_v20 = vpop.f32.mrf.mxu0 }
 0x164   : > { %v1803_v29 = vsel %vm1766_vm10, %v1738_v21, %v1802_v25  ;;  %v735_v30 = vcombine.high %v733_v52, %v733_v52  ;;  %v1107_v2 = vsel %vm987_vm4, %v734_v22, -inf  ;;  %v1114_v31 = vsel %vm987_vm4, %v733_v52, -inf }
 0x165   : > { %v1804_v5 = vsel %vm1768_vm11, %v1739_v24, %v1803_v29  ;;  %v1102_v34 = vmax.f32 %v1100_v23, %v1101_v26  ;;  %v1108_v35 = vrot.slane %v1107_v2, 4  ;;  %v1115_v36 = vrot.slane %v1114_v31, 4 }
 0x166   : > { %v1824_v38 = vpack.c.b16 %v1804_v5, %v1804_v5  ;;  %v1121_v39 = vsel %vm987_vm4, %v735_v30, -inf  ;;  %v625_v40 = vmax.f32 %v623_v27, %v2677_v51  ;;  %v565_v41 = vmax.f32 %v2180_v28, 0.0  ;;  %v526_v27 = vpop.f32.mrf.mxu1 }
 0x167   : > { %v1103_v42 = vrot.slane %v1102_v34, 2  ;;  %v1109_v43 = vmax.f32 %v1107_v2, %v1108_v35  ;;  %v1116_v46 = vmax.f32 %v1114_v31, %v1115_v36  ;;  %v1122_v47 = vrot.slane %v1121_v39, 4 }
 0x168   : > { %1841 = vst.msk [vmem:[%s2638_s4 + $0x14] sm:$0xf] %vm1835_vm12, %v1824_v38  ;;  %v855_v50 = vcombine.high %v625_v40, %v625_v40  ;;  %v862_v49 = vrot.slane %v625_v40, %v2558_v37  ;;  %v603_v53 = vsel %vm586_vm3, %v565_v41, -inf  ;;  %v581_v58 = vmax.f32 %v2717_v48, 0.0 }
 0x169   : > { %v1104_v61 = vmax.f32 %v1102_v34, %v1103_v42  ;;  %v1110_v33 = vrot.slane %v1109_v43, 2  ;;  %v1117_v56 = vrot.slane %v1116_v46, 2  ;;  %v1123_v54 = vmax.f32 %v1121_v39, %v1122_v47 }
 0x16a   : > { %v869_v51 = vrot.slane %v855_v50, %v2558_v37  ;;  %v870_v60 = vcombine.high %v862_v49, %v862_v49  ;;  %v1324_v55 = vsel %vm987_vm4, %v862_v49, -inf  ;;  %v563_v2 = vmax.f32 %v462_v20, 0.0 }
 0x16b   : > { %v1105_v62 = vrot.slane %v1104_v61, 1  ;;  %v1111_v63 = vmax.f32 %v1109_v43, %v1110_v33  ;;  %v1118_v0 = vmax.f32 %v1116_v46, %v1117_v56  ;;  %v1124_v1 = vrot.slane %v1123_v54, 2 }
 0x16c   : > { %v871_v3 = vcombine.high %v869_v51, %v869_v51  ;;  %v1325_v57 = vrot.slane %v1324_v55, 4  ;;  %v1331_v45 = vsel %vm987_vm4, %v870_v60, -inf  ;;  %v1338_v4 = vsel %vm987_vm4, %v869_v51, -inf }
 0x16d   : > { %v1106_v6 = vmax.f32 %v1104_v61, %v1105_v62  ;;  %v1112_v7 = vrot.slane %v1111_v63, 1  ;;  %v1119_v8 = vrot.slane %v1118_v0, 1  ;;  %v1125_v9 = vmax.f32 %v1123_v54, %v1124_v1 }
 0x16e   : > { %v1326_v10 = vmax.f32 %v1324_v55, %v1325_v57  ;;  %v1332_v11 = vrot.slane %v1331_v45, 4  ;;  %v1339_v12 = vrot.slane %v1338_v4, 4  ;;  %v1345_v13 = vsel %vm987_vm4, %v871_v3, -inf }
 0x16f   : > { %v1113_v14 = vmax.f32 %v1111_v63, %v1112_v7  ;;  %v1120_v15 = vmax.f32 %v1118_v0, %v1119_v8  ;;  %v1126_v44 = vrot.slane %v1125_v9, 1  ;;  %v2098_v16 = vpack.c.bf16 %v1106_v6, %v1106_v6 }
 0x170   : > { %v1327_v32 = vrot.slane %v1326_v10, 2  ;;  %v1333_v17 = vmax.f32 %v1331_v45, %v1332_v11  ;;  %v1340_v18 = vmax.f32 %v1338_v4, %v1339_v12  ;;  %v1346_v19 = vrot.slane %v1345_v13, 4 }
 0x171   : > { %v1127_v21 = vmax.f32 %v1125_v9, %v1126_v44  ;;  %v2099_v59 = vpack.c.bf16 %v1113_v14, %v1113_v14  ;;  %v2100_v52 = vpack.c.bf16 %v1120_v15, %v1120_v15  ;;  %v1708_v22 = vunpack.c.l.b16 %v2098_v16 }
 0x172   : > { %v1328_v23 = vmax.f32 %v1326_v10, %v1327_v32  ;;  %v1334_v24 = vrot.slane %v1333_v17, 2  ;;  %v1341_v25 = vrot.slane %v1340_v18, 2  ;;  %v1347_v26 = vmax.f32 %v1345_v13, %v1346_v19 }
 0x173   : > { %v2101_v28 = vpack.c.bf16 %v1127_v21, %v1127_v21  ;;  %v1709_v29 = vunpack.c.l.b16 %v2099_v59  ;;  %v1710_v30 = vunpack.c.l.b16 %v2100_v52  ;;  %v602_v39 = vsel %vm586_vm3, %v563_v2, -inf }
 0x174   : > { %v1329_v31 = vrot.slane %v1328_v23, 1  ;;  %v1335_v5 = vmax.f32 %v1333_v17, %v1334_v24  ;;  %v1342_v34 = vmax.f32 %v1340_v18, %v1341_v25  ;;  %v1348_v35 = vrot.slane %v1347_v26, 2 }
 0x175   : > { %v1711_v36 = vunpack.c.l.b16 %v2101_v28  ;;  %v1777_v38 = vsel %vm1756_vm5, %v1709_v29, %v1708_v22  ;;  %v579_v40 = vmax.f32 %v526_v27, 0.0  ;;  %v627_v48 = vsel %vm586_vm3, %v581_v58, -inf }
 0x176   : > { %v1778_v41 = vsel %vm1758_vm6, %v1710_v30, %v1777_v38  ;;  %v1330_v42 = vmax.f32 %v1328_v23, %v1329_v31  ;;  %v1336_v43 = vrot.slane %v1335_v5, 1  ;;  %v1343_v46 = vrot.slane %v1342_v34, 1 }
 0x177   : > { %v1349_v47 = vmax.f32 %v1347_v26, %v1348_v35  ;;  %v604_v50 = vmax.f32 %v602_v39, %v603_v53  ;;  %v626_v49 = vsel %vm586_vm3, %v579_v40, -inf  ;;  %v2736_v62 = vsel %vm1760_vm7, %v1711_v36, %v1778_v41 }
 0x178   : > { %v1337_v61 = vmax.f32 %v1335_v5, %v1336_v43  ;;  %v1344_v33 = vmax.f32 %v1342_v34, %v1343_v46  ;;  %v2130_v56 = vpack.c.bf16 %v1330_v42, %v1330_v42  ;;  %v628_v54 = vmax.f32 %v626_v49, %v627_v48  ;;  %v2183_v42 = vpop.f32.mrf.mxu0 }
 0x179   : > { %v1350_v51 = vrot.slane %v1349_v47, 1  ;;  %v736_v60 = vcombine.high %v604_v50, %v604_v50  ;;  %v743_v55 = vrot.slane %v604_v50, %v2558_v37 }
 0x17a   : > { %v2131_v63 = vpack.c.bf16 %v1337_v61, %v1337_v61  ;;  %v2132_v0 = vpack.c.bf16 %v1344_v33, %v1344_v33  ;;  %v1740_v1 = vunpack.c.l.b16 %v2130_v56  ;;  %v872_v3 = vcombine.high %v628_v54, %v628_v54 }
 0x17b   : > { %v1351_v57 = vmax.f32 %v1349_v47, %v1350_v51  ;;  %v750_v53 = vrot.slane %v736_v60, %v2558_v37  ;;  %v751_v58 = vcombine.high %v743_v55, %v743_v55  ;;  %v1128_v45 = vsel %vm987_vm4, %v743_v55, -inf }
 0x17c   : > { %v1741_v4 = vunpack.c.l.b16 %v2131_v63  ;;  %v1742_v6 = vunpack.c.l.b16 %v2132_v0  ;;  %v1129_v7 = vrot.slane %v1128_v45, 4  ;;  %v879_v8 = vrot.slane %v628_v54, %v2558_v37 }
 0x17d   : > { %v2133_v9 = vpack.c.bf16 %v1351_v57, %v1351_v57  ;;  %v752_v10 = vcombine.high %v750_v53, %v750_v53  ;;  %v1135_v11 = vsel %vm987_vm4, %v751_v58, -inf  ;;  %v1142_v12 = vsel %vm987_vm4, %v750_v53, -inf }
 0x17e   : > { %v1805_v13 = vsel %vm1756_vm5, %v1741_v4, %v1740_v1  ;;  %v1130_v14 = vmax.f32 %v1128_v45, %v1129_v7  ;;  %v1136_v15 = vrot.slane %v1135_v11, 4  ;;  %v1143_v44 = vrot.slane %v1142_v12, 4 }
 0x17f   : > { %v2744_v16 = vunpack.c.l.b16 %v2133_v9  ;;  %v2747_v32 = vsel %vm1758_vm6, %v1742_v6, %v1805_v13  ;;  %v1149_v17 = vsel %vm987_vm4, %v752_v10, -inf  ;;  %v886_v18 = vrot.slane %v872_v3, %v2558_v37  ;;  %v475_v3 = vpop.f32.mrf.mxu0  ;;  %v2199_v9 = vpop.f32.mrf.mxu1 }
 0x180   : > { %v1131_v19 = vrot.slane %v1130_v14, 2  ;;  %v1137_v20 = vmax.f32 %v1135_v11, %v1136_v15  ;;  %v1144_v21 = vmax.f32 %v1142_v12, %v1143_v44  ;;  %v1150_v59 = vrot.slane %v1149_v17, 4 }
 0x181   : > { %v887_v52 = vcombine.high %v879_v8, %v879_v8  ;;  %v888_v22 = vcombine.high %v886_v18, %v886_v18  ;;  %v1352_v23 = vsel %vm987_vm4, %v879_v8, -inf  ;;  %v1366_v24 = vsel %vm987_vm4, %v886_v18, -inf  ;;  %v2184_v18 = vpop.f32.mrf.mxu0 }
 0x182   : > { %v1132_v25 = vmax.f32 %v1130_v14, %v1131_v19  ;;  %v1138_v26 = vrot.slane %v1137_v20, 2  ;;  %v1145_v27 = vrot.slane %v1144_v21, 2  ;;  %v1151_v28 = vmax.f32 %v1149_v17, %v1150_v59 }
 0x183   : > { %v1353_v29 = vrot.slane %v1352_v23, 4  ;;  %v1359_v30 = vsel %vm987_vm4, %v887_v52, -inf  ;;  %v1367_v2 = vrot.slane %v1366_v24, 4  ;;  %v1373_v31 = vsel %vm987_vm4, %v888_v22, -inf }
 0x184   : > { %v1133_v5 = vrot.slane %v1132_v25, 1  ;;  %v1139_v34 = vmax.f32 %v1137_v20, %v1138_v26  ;;  %v1146_v35 = vmax.f32 %v1144_v21, %v1145_v27  ;;  %v1152_v36 = vrot.slane %v1151_v28, 2 }
 0x185   : > { %v1354_v38 = vmax.f32 %v1352_v23, %v1353_v29  ;;  %v1360_v39 = vrot.slane %v1359_v30, 4  ;;  %v1368_v40 = vmax.f32 %v1366_v24, %v1367_v2  ;;  %v1374_v41 = vrot.slane %v1373_v31, 4 }
 0x186   : > { %v1134_v43 = vmax.f32 %v1132_v25, %v1133_v5  ;;  %v1140_v46 = vrot.slane %v1139_v34, 1  ;;  %v1147_v47 = vrot.slane %v1146_v35, 1  ;;  %v1153_v48 = vmax.f32 %v1151_v28, %v1152_v36  ;;  %v478_v5 = vpop.f32.mrf.mxu0 }
 0x187   : > { %v1355_v50 = vrot.slane %v1354_v38, 2  ;;  %v1361_v49 = vmax.f32 %v1359_v30, %v1360_v39  ;;  %v1369_v61 = vrot.slane %v1368_v40, 2  ;;  %v1375_v33 = vmax.f32 %v1373_v31, %v1374_v41 }
 0x188   : > { %v1141_v56 = vmax.f32 %v1139_v34, %v1140_v46  ;;  %v1148_v54 = vmax.f32 %v1146_v35, %v1147_v47  ;;  %v1154_v51 = vrot.slane %v1153_v48, 1  ;;  %v2102_v60 = vpack.c.bf16 %v1134_v43, %v1134_v43 }
 0x189   : > { %v1356_v55 = vmax.f32 %v1354_v38, %v1355_v50  ;;  %v1362_v63 = vrot.slane %v1361_v49, 2  ;;  %v1370_v0 = vmax.f32 %v1368_v40, %v1369_v61  ;;  %v1376_v1 = vrot.slane %v1375_v33, 2 }
 0x18a   : > { %v1155_v57 = vmax.f32 %v1153_v48, %v1154_v51  ;;  %v2103_v53 = vpack.c.bf16 %v1141_v56, %v1141_v56  ;;  %v2104_v58 = vpack.c.bf16 %v1148_v54, %v1148_v54  ;;  %v1712_v45 = vunpack.c.l.b16 %v2102_v60 }
 0x18b   : > { %v1357_v4 = vrot.slane %v1356_v55, 1  ;;  %v1363_v6 = vmax.f32 %v1361_v49, %v1362_v63  ;;  %v1371_v7 = vrot.slane %v1370_v0, 1  ;;  %v1377_v8 = vmax.f32 %v1375_v33, %v1376_v1 }
 0x18c   : > { %v2105_v10 = vpack.c.bf16 %v1155_v57, %v1155_v57  ;;  %v1713_v11 = vunpack.c.l.b16 %v2103_v53  ;;  %v1714_v12 = vunpack.c.l.b16 %v2104_v58  ;;  %v1780_v13 = vsel %vm1762_vm8, %v1712_v45, %v2736_v62  ;;  %v539_v62 = vpop.f32.mrf.mxu1 }
 0x18d   : > { %v1358_v14 = vmax.f32 %v1356_v55, %v1357_v4  ;;  %v1364_v15 = vrot.slane %v1363_v6, 1  ;;  %v1372_v44 = vmax.f32 %v1370_v0, %v1371_v7  ;;  %v1378_v17 = vrot.slane %v1377_v8, 1 }
 0x18e   : > { %v1715_v19 = vunpack.c.l.b16 %v2105_v10  ;;  %v1781_v20 = vsel %vm1764_vm9, %v1713_v11, %v1780_v13  ;;  %v1807_v21 = vsel %vm1760_vm7, %v2744_v16, %v2747_v32  ;;  %v568_v59 = vmax.f32 %v2183_v42, 0.0 }
 0x18f   : > { %v1782_v52 = vsel %vm1766_vm10, %v1714_v12, %v1781_v20  ;;  %v1365_v22 = vmax.f32 %v1363_v6, %v1364_v15  ;;  %v1379_v23 = vmax.f32 %v1377_v8, %v1378_v17  ;;  %v2134_v24 = vpack.c.bf16 %v1358_v14, %v1358_v14 }
 0x190   : > { %v1783_v25 = vsel %vm1768_vm11, %v1715_v19, %v1782_v52  ;;  %v2136_v26 = vpack.c.bf16 %v1372_v44, %v1372_v44  ;;  %v584_v27 = vmax.f32 %v2199_v9, 0.0  ;;  %v566_v28 = vmax.f32 %v475_v3, 0.0 }
 0x191   : > { %v1821_v29 = vpack.c.b16 %v1783_v25, %v1783_v25  ;;  %v2135_v30 = vpack.c.bf16 %v1365_v22, %v1365_v22  ;;  %v2137_v2 = vpack.c.bf16 %v1379_v23, %v1379_v23  ;;  %v1744_v31 = vunpack.c.l.b16 %v2134_v24 }
 0x192   : > { %v1746_v34 = vunpack.c.l.b16 %v2136_v26  ;;  %v606_v16 = vsel %vm586_vm3, %v568_v59, -inf  ;;  %v605_v32 = vsel %vm586_vm3, %v566_v28, -inf  ;;  %v582_v35 = vmax.f32 %v539_v62, 0.0 }
 0x193   : > { %1838 = vst.msk [vmem:[%s2638_s4 + $0x8] sm:$0xf] %vm1835_vm12, %v1821_v29  ;;  %v1745_v36 = vunpack.c.l.b16 %v2135_v30  ;;  %v1747_v38 = vunpack.c.l.b16 %v2137_v2  ;;  %v1808_v39 = vsel %vm1762_vm8, %v1744_v31, %v1807_v21  ;;  %v607_v40 = vmax.f32 %v605_v32, %v606_v16 }
 0x194   : > { %v630_v41 = vsel %vm586_vm3, %v584_v27, -inf  ;;  %v629_v42 = vsel %vm586_vm3, %v582_v35, -inf  ;;  %v569_v43 = vmax.f32 %v2184_v18, 0.0  ;;  %v567_v46 = vmax.f32 %v478_v5, 0.0 }
 0x195   : > { %v1809_v47 = vsel %vm1764_vm9, %v1745_v36, %v1808_v39  ;;  %v753_v48 = vcombine.high %v607_v40, %v607_v40  ;;  %v760_v50 = vrot.slane %v607_v40, %v2558_v37  ;;  %v631_v49 = vmax.f32 %v629_v42, %v630_v41  ;;  %v2200_v41 = vpop.f32.mrf.mxu1 }
 0x196   : > { %v1810_v61 = vsel %vm1766_vm10, %v1746_v34, %v1809_v47  ;;  %v608_v33 = vsel %vm586_vm3, %v567_v46, -inf  ;;  %v609_v58 = vsel %vm586_vm3, %v569_v43, -inf }
 0x197   : > { %v1811_v56 = vsel %vm1768_vm11, %v1747_v38, %v1810_v61  ;;  %v767_v54 = vrot.slane %v753_v48, %v2558_v37  ;;  %v768_v51 = vcombine.high %v760_v50, %v760_v50  ;;  %v1156_v60 = vsel %vm987_vm4, %v760_v50, -inf }
 0x198   : > { %v1825_v55 = vpack.c.b16 %v1811_v56, %v1811_v56  ;;  %v1157_v63 = vrot.slane %v1156_v60, 4  ;;  %v889_v0 = vcombine.high %v631_v49, %v631_v49  ;;  %v896_v1 = vrot.slane %v631_v49, %v2558_v37 }
 0x199   : > { %v769_v3 = vcombine.high %v767_v54, %v767_v54  ;;  %v1163_v57 = vsel %vm987_vm4, %v768_v51, -inf  ;;  %v1170_v53 = vsel %vm987_vm4, %v767_v54, -inf  ;;  %v610_v11 = vmax.f32 %v608_v33, %v609_v58 }
 0x19a   : > { %1842 = vst.msk [vmem:[%s2638_s4 + $0x18] sm:$0xf] %vm1835_vm12, %v1825_v55  ;;  %v1158_v45 = vmax.f32 %v1156_v60, %v1157_v63  ;;  %v1164_v4 = vrot.slane %v1163_v57, 4  ;;  %v1171_v6 = vrot.slane %v1170_v53, 4  ;;  %v903_v7 = vrot.slane %v889_v0, %v2558_v37 }
 0x19b   : > { %v1177_v8 = vsel %vm987_vm4, %v769_v3, -inf  ;;  %v904_v9 = vcombine.high %v896_v1, %v896_v1  ;;  %v1380_v10 = vsel %vm987_vm4, %v896_v1, -inf  ;;  %v770_v48 = vcombine.high %v610_v11, %v610_v11 }
 0x19c   : > { %v1159_v12 = vrot.slane %v1158_v45, 2  ;;  %v1165_v13 = vmax.f32 %v1163_v57, %v1164_v4  ;;  %v1172_v14 = vmax.f32 %v1170_v53, %v1171_v6  ;;  %v1178_v15 = vrot.slane %v1177_v8, 4 }
 0x19d   : > { %v905_v44 = vcombine.high %v903_v7, %v903_v7  ;;  %v1381_v17 = vrot.slane %v1380_v10, 4  ;;  %v1387_v18 = vsel %vm987_vm4, %v904_v9, -inf  ;;  %v1394_v19 = vsel %vm987_vm4, %v903_v7, -inf }
 0x19e   : > { %v1160_v20 = vmax.f32 %v1158_v45, %v1159_v12  ;;  %v1166_v21 = vrot.slane %v1165_v13, 2  ;;  %v1173_v59 = vrot.slane %v1172_v14, 2  ;;  %v1179_v52 = vmax.f32 %v1177_v8, %v1178_v15  ;;  %v542_v12 = vpop.f32.mrf.mxu1 }
 0x19f   : > { %v1382_v22 = vmax.f32 %v1380_v10, %v1381_v17  ;;  %v1388_v23 = vrot.slane %v1387_v18, 4  ;;  %v1395_v24 = vrot.slane %v1394_v19, 4  ;;  %v1401_v62 = vsel %vm987_vm4, %v905_v44, -inf }
 0x1a0   : > { %v1161_v25 = vrot.slane %v1160_v20, 1  ;;  %v1167_v26 = vmax.f32 %v1165_v13, %v1166_v21  ;;  %v1174_v27 = vmax.f32 %v1172_v14, %v1173_v59  ;;  %v1180_v28 = vrot.slane %v1179_v52, 2 }
 0x1a1   : > { %v1383_v29 = vrot.slane %v1382_v22, 2  ;;  %v1389_v30 = vmax.f32 %v1387_v18, %v1388_v23  ;;  %v1396_v2 = vmax.f32 %v1394_v19, %v1395_v24  ;;  %v1402_v31 = vrot.slane %v1401_v62, 4 }
 0x1a2   : > { %v1162_v5 = vmax.f32 %v1160_v20, %v1161_v25  ;;  %v1168_v34 = vrot.slane %v1167_v26, 1  ;;  %v1175_v16 = vrot.slane %v1174_v27, 1  ;;  %v1181_v32 = vmax.f32 %v1179_v52, %v1180_v28 }
 0x1a3   : > { %v1384_v35 = vmax.f32 %v1382_v22, %v1383_v29  ;;  %v1390_v36 = vrot.slane %v1389_v30, 2  ;;  %v1397_v38 = vrot.slane %v1396_v2, 2  ;;  %v1403_v39 = vmax.f32 %v1401_v62, %v1402_v31 }
 0x1a4   : > { %v1169_v40 = vmax.f32 %v1167_v26, %v1168_v34  ;;  %v1176_v42 = vmax.f32 %v1174_v27, %v1175_v16  ;;  %v1182_v43 = vrot.slane %v1181_v32, 1  ;;  %v2106_v50 = vpack.c.bf16 %v1162_v5, %v1162_v5 }
 0x1a5   : > { %v1404_v46 = vrot.slane %v1403_v39, 2  ;;  %v1391_v47 = vmax.f32 %v1389_v30, %v1390_v36  ;;  %v1385_v49 = vrot.slane %v1384_v35, 1  ;;  %v1398_v61 = vmax.f32 %v1396_v2, %v1397_v38 }
 0x1a6   : > { %v585_v33 = vmax.f32 %v2200_v41, 0.0  ;;  %v2107_v56 = vpack.c.bf16 %v1169_v40, %v1169_v40  ;;  %v777_v54 = vrot.slane %v610_v11, %v2558_v37  ;;  %v1183_v51 = vmax.f32 %v1181_v32, %v1182_v43 }
 0x1a7   : > { %v2108_v60 = vpack.c.bf16 %v1176_v42, %v1176_v42  ;;  %v1405_v55 = vmax.f32 %v1403_v39, %v1404_v46  ;;  %v1392_v63 = vrot.slane %v1391_v47, 1  ;;  %v784_v0 = vrot.slane %v770_v48, %v2558_v37 }
 0x1a8   : > { %v785_v1 = vcombine.high %v777_v54, %v777_v54  ;;  %v1716_v3 = vunpack.c.l.b16 %v2106_v50  ;;  %v1386_v57 = vmax.f32 %v1384_v35, %v1385_v49  ;;  %v1399_v53 = vrot.slane %v1398_v61, 1 }
 0x1a9   : > { %v633_v58 = vsel %vm586_vm3, %v585_v33, -inf  ;;  %v1717_v45 = vunpack.c.l.b16 %v2107_v56  ;;  %v786_v4 = vcombine.high %v784_v0, %v784_v0  ;;  %v1184_v6 = vsel %vm987_vm4, %v777_v54, -inf }
 0x1aa   : > { %v1191_v7 = vsel %vm987_vm4, %v785_v1, -inf  ;;  %v2109_v8 = vpack.c.bf16 %v1183_v51, %v1183_v51  ;;  %v1718_v9 = vunpack.c.l.b16 %v2108_v60  ;;  %v1406_v10 = vrot.slane %v1405_v55, 1 }
 0x1ab   : > { %v1185_v11 = vrot.slane %v1184_v6, 4  ;;  %v1393_v13 = vmax.f32 %v1391_v47, %v1392_v63  ;;  %v1192_v14 = vrot.slane %v1191_v7, 4  ;;  %v1198_v15 = vsel %vm987_vm4, %v784_v0, -inf }
 0x1ac   : > { %v1205_v44 = vsel %vm987_vm4, %v786_v4, -inf  ;;  %v2796_v17 = vmax.f32 %v1398_v61, %v1399_v53  ;;  %v2138_v18 = vpack.c.bf16 %v1386_v57, %v1386_v57  ;;  %v1199_v20 = vrot.slane %v1198_v15, 4 }
 0x1ad   : > { %v1186_v19 = vmax.f32 %v1184_v6, %v1185_v11  ;;  %v1784_v21 = vsel %vm1756_vm5, %v1717_v45, %v1716_v3  ;;  %v1193_v59 = vmax.f32 %v1191_v7, %v1192_v14  ;;  %v1206_v52 = vrot.slane %v1205_v44, 4 }
 0x1ae   : > { %v583_v22 = vmax.f32 %v542_v12, 0.0  ;;  %v1719_v23 = vunpack.c.l.b16 %v2109_v8  ;;  %v2799_v24 = vmax.f32 %v1405_v55, %v1406_v10  ;;  %v1200_v25 = vmax.f32 %v1198_v15, %v1199_v20 }
 0x1af   : > { %v1187_v62 = vrot.slane %v1186_v19, 2  ;;  %v2139_v26 = vpack.c.bf16 %v1393_v13, %v1393_v13  ;;  %v1194_v27 = vrot.slane %v1193_v59, 2  ;;  %v1207_v28 = vmax.f32 %v1205_v44, %v1206_v52 }
 0x1b0   : > { %v632_v29 = vsel %vm586_vm3, %v583_v22, -inf  ;;  %v1785_v30 = vsel %vm1758_vm6, %v1718_v9, %v1784_v21  ;;  %v1201_v31 = vrot.slane %v1200_v25, 2  ;;  %v2140_v34 = vpack.c.bf16 %v2796_v17, %v2796_v17 }
 0x1b1   : > { %v1188_v2 = vmax.f32 %v1186_v19, %v1187_v62  ;;  %v634_v5 = vmax.f32 %v632_v29, %v633_v58  ;;  %v1748_v16 = vunpack.c.l.b16 %v2138_v18  ;;  %v1195_v32 = vmax.f32 %v1193_v59, %v1194_v27 }
 0x1b2   : > { %v1208_v35 = vrot.slane %v1207_v28, 2  ;;  %v1202_v38 = vmax.f32 %v1200_v25, %v1201_v31  ;;  %v2141_v41 = vpack.c.bf16 %v2799_v24, %v2799_v24  ;;  %v1749_v42 = vunpack.c.l.b16 %v2139_v26 }
 0x1b3   : > { %v1189_v36 = vrot.slane %v1188_v2, 1  ;;  %v906_v39 = vcombine.high %v634_v5, %v634_v5  ;;  %v913_v40 = vrot.slane %v634_v5, %v2558_v37  ;;  %v1196_v43 = vrot.slane %v1195_v32, 1 }
 0x1b4   : > { %v1209_v46 = vmax.f32 %v1207_v28, %v1208_v35  ;;  %v1203_v48 = vrot.slane %v1202_v38, 1  ;;  %v1786_v56 = vsel %vm1760_vm7, %v1719_v23, %v1785_v30  ;;  %v1750_v17 = vunpack.c.l.b16 %v2140_v34 }
 0x1b5   : > { %v1190_v47 = vmax.f32 %v1188_v2, %v1189_v36  ;;  %v920_v50 = vrot.slane %v906_v39, %v2558_v37  ;;  %v921_v49 = vcombine.high %v913_v40, %v913_v40  ;;  %v1197_v61 = vmax.f32 %v1195_v32, %v1196_v43 }
 0x1b6   : > { %v1210_v33 = vrot.slane %v1209_v46, 1  ;;  %v1408_v54 = vsel %vm987_vm4, %v913_v40, -inf  ;;  %v1204_v51 = vmax.f32 %v1202_v38, %v1203_v48  ;;  %v1812_v21 = vsel %vm1756_vm5, %v1749_v42, %v1748_v16 }
 0x1b7   : > { %v2110_v60 = vpack.c.bf16 %v1190_v47, %v1190_v47  ;;  %v922_v55 = vcombine.high %v920_v50, %v920_v50  ;;  %v1409_v63 = vrot.slane %v1408_v54, 4  ;;  %v2111_v1 = vpack.c.bf16 %v1197_v61, %v1197_v61 }
 0x1b8   : > { %v1211_v0 = vmax.f32 %v1209_v46, %v1210_v33  ;;  %v1415_v3 = vsel %vm987_vm4, %v921_v49, -inf  ;;  %v1422_v57 = vsel %vm987_vm4, %v920_v50, -inf  ;;  %v2112_v53 = vpack.c.bf16 %v1204_v51, %v1204_v51 }
 0x1b9   : > { %v1720_v58 = vunpack.c.l.b16 %v2110_v60  ;;  %v1410_v37 = vmax.f32 %v1408_v54, %v1409_v63  ;;  %v1416_v45 = vrot.slane %v1415_v3, 4  ;;  %v1721_v6 = vunpack.c.l.b16 %v2111_v1 }
 0x1ba   : > { %v2113_v4 = vpack.c.bf16 %v1211_v0, %v1211_v0  ;;  %v1423_v7 = vrot.slane %v1422_v57, 4  ;;  %v1429_v8 = vsel %vm987_vm4, %v922_v55, -inf  ;;  %v1722_v9 = vunpack.c.l.b16 %v2112_v53 }
 0x1bb   : > { %v1787_v10 = vsel %vm1762_vm8, %v1720_v58, %v1786_v56  ;;  %v1411_v11 = vrot.slane %v1410_v37, 2  ;;  %v1417_v12 = vmax.f32 %v1415_v3, %v1416_v45  ;;  %v1430_v44 = vrot.slane %v1429_v8, 4 }
 0x1bc   : > { %v1723_v13 = vunpack.c.l.b16 %v2113_v4  ;;  %v1788_v14 = vsel %vm1764_vm9, %v1721_v6, %v1787_v10  ;;  %v1424_v15 = vmax.f32 %v1422_v57, %v1423_v7  ;;  %v1751_v25 = vunpack.c.l.b16 %v2141_v41 }
 0x1bd   : > { %v1789_v18 = vsel %vm1766_vm10, %v1722_v9, %v1788_v14  ;;  %v1412_v19 = vmax.f32 %v1410_v37, %v1411_v11  ;;  %v1418_v20 = vrot.slane %v1417_v12, 2  ;;  %v1431_v22 = vmax.f32 %v1429_v8, %v1430_v44 }
 0x1be   : > { %v1790_v59 = vsel %vm1768_vm11, %v1723_v13, %v1789_v18  ;;  %v1425_v52 = vrot.slane %v1424_v15, 2  ;;  %v1813_v28 = vsel %vm1758_vm6, %v1750_v17, %v1812_v21 }
 0x1bf   : > { %v1822_v23 = vpack.c.b16 %v1790_v59, %v1790_v59  ;;  %v1413_v24 = vrot.slane %v1412_v19, 1  ;;  %v1419_v62 = vmax.f32 %v1417_v12, %v1418_v20  ;;  %v1432_v27 = vrot.slane %v1431_v22, 2 }
 0x1c0   : > { %v1426_v26 = vmax.f32 %v1424_v15, %v1425_v52  ;;  %v1814_v35 = vsel %vm1760_vm7, %v1751_v25, %v1813_v28 }
 0x1c1   : > { %1839 = vst.msk [vmem:[%s2638_s4 + $0xc] sm:$0xf] %vm1835_vm12, %v1822_v23  ;;  %v1414_v29 = vmax.f32 %v1412_v19, %v1413_v24  ;;  %v1420_v30 = vrot.slane %v1419_v62, 1  ;;  %v1433_v31 = vmax.f32 %v1431_v22, %v1432_v27 }
 0x1c2   : > { %v1427_v2 = vrot.slane %v1426_v26, 1 }
 0x1c3   : > { %v1421_v5 = vmax.f32 %v1419_v62, %v1420_v30  ;;  %v2142_v34 = vpack.c.bf16 %v1414_v29, %v1414_v29  ;;  %v1434_v32 = vrot.slane %v1433_v31, 1 }
 0x1c4   : > { %v1428_v16 = vmax.f32 %v1426_v26, %v1427_v2 }
 0x1c5   : > { %v2143_v36 = vpack.c.bf16 %v1421_v5, %v1421_v5  ;;  %v1752_v38 = vunpack.c.l.b16 %v2142_v34  ;;  %v1435_v39 = vmax.f32 %v1433_v31, %v1434_v32 }
 0x1c6   : > { %v2144_v40 = vpack.c.bf16 %v1428_v16, %v1428_v16 }
 0x1c7   : > { %v1753_v41 = vunpack.c.l.b16 %v2143_v36  ;;  %v1815_v42 = vsel %vm1762_vm8, %v1752_v38, %v1814_v35  ;;  %v2145_v43 = vpack.c.bf16 %v1435_v39, %v1435_v39 }
 0x1c8   : > { %v1754_v46 = vunpack.c.l.b16 %v2144_v40 }
 0x1c9   : > { %v1816_v47 = vsel %vm1764_vm9, %v1753_v41, %v1815_v42  ;;  %v1755_v48 = vunpack.c.l.b16 %v2145_v43 }
 0x1ca   : > { %v1817_v50 = vsel %vm1766_vm10, %v1754_v46, %v1816_v47 }
 0x1cb   : > { %v1818_v49 = vsel %vm1768_vm11, %v1755_v48, %v1817_v50 }
 0x1cc   : > { %v1826_v61 = vpack.c.b16 %v1818_v49, %v1818_v49 }
 0x1ce   : > { %1843 = vst.msk [vmem:[%s2638_s4 + $0x1c] sm:$0xf] %vm1835_vm12, %v1826_v61 }
 0x1cf   : > { %2332 = shalt.err (!%p2329_p6)
}
 0x1d0   : > { %s2333_s26 = scalar_lea.hbm %s2832_s15, 512  ;;  %s2337_s29 = scalar_lea.hbm %s2886_s2, 1024 }
 0x1d1   : > { %p2334_p7 = scmp.ne.s32.totalorder %s2832_s15, %s2333_s26  ;;  %p2338_p13 = scmp.lt.s32.totalorder %s2832_s15, %s2886_s2 }
 0x1d2   : > { %p2339_p2 = scmp.lt.s32.totalorder %s2337_s29, %s2333_s26 }
 0x1d3   : > { %p2335_p10 = pnand %p2334_p7, %p2475_p9 }
 0x1d4   : > { %p2340_p8 = por %p2339_p2, %p2338_p13 }
 0x1d5   : > { %p2336_p4 = pneg %p2335_p10 }
 0x1d7   : > { %p2341_p12 = pnand %p2340_p8, %p2336_p4 }
 0x1d9   : > { %2344 = shalt.err (!%p2341_p12)
}
 0x1da   : > { %s2407_s21 = smov 64   ;;  %s2408_s4 = smov 4  }
 0x1db   : > { %2207 = dma.vmem_to_hbm [thread:$0]  (%p2475_p9), %s2834_s6, 512, %s2832_s15, %s1845_s12, %s2407_s21, %s2407_s21, %s2408_s4  }
 0x1dc PF: > { %s1876_s5 = sand.u32 1, %s2379_s9   ;;  %p2892_p0 = scmp.ge.s32.totalorder %s2399_s14, 2 }
 0x1dd   : > { %s1877_s7 = scalar_lea.sflag [#allocation4], %s1876_s5 }
 0x1de   : > { %p2214_p1 = pnand %p2892_p0, %p2482_p11 }
 0x1e0   : > { %p2215_p3 = pneg %p2214_p1 }
 0x1e2   : > { %2374 = dma.done.wait (%p2215_p3), %s1877_s7, 512  }
 0x1e3   : > { %2376 = vsyncadd (%p2215_p3), %s1877_s7, 4294966784  ;;  %s18_s14 = sadd.s32 1, %s2399_s14   ;;  %s2893_s9 = smov %s2383_s10 }
 0x1e4   : > { %p15_p5 = scmp.ge.s32.totalorder %s18_s14, 4   ;;  %s2894_s10 = smov %s2387_s11 }
 0x1e5   : > { %s2895_s11 = smov %s2480_s23  ;;  %s2896_s12 = smov %s2395_s13 }
 0x1e6   : > { %s2897_s13 = smov %s2899_s17  ;;  %17 = sbr.rel (!%p15_p5) target bundleno = 6 (0x6), region = 76 }
 0x1eb   :  { %1882 = vsyncpa [#allocation3], 1 }
 0x1ec   :  { %1884 = vsyncpa [#allocation3 + $0x1], 1 }
 0x1ed   :  { %1885 = vsyncpa [#allocation4], 1 }
 0x1ee   :  { %1887 = vsyncpa [#allocation4 + $0x1], 1 }

</bundles_post_ra>
